<compile_context>
chip_gen: v7x
topology: tpu7x:2x2x1
jax: 0.10.0
libtpu: 0.0.40
codegen_flags: <defaults>
</compile_context>

<pallas_src>
import numpy as np
import jax
import jax.numpy as jnp
from jax import lax
from jax.experimental import pallas as pl
from jax.experimental.pallas import tpu as pltpu

LANE = 128


def _round_up(x, m):
    return (x + m - 1) // m * m


def bilstm_dense_kernel(x_ref,        # (T, D)     input rows (batch row B-1)
                        wih_all_ref,  # (D, 8H)    [fwd i,f,g,o | bwd i,f,g,o]
                        b_all_ref,    # (1, 8H)
                        whh_f_ref,    # (H, 4H)
                        whh_b_ref,    # (H, 4H)
                        w1_ref,       # (2H, DH)
                        b1_ref,       # (1, DH)
                        w2_ref,       # (DH, OUTP)
                        b2_ref,       # (1, OUTP)
                        out_ref,      # (T, OUTP)
                        pre_ref):     # scratch (T, 8H) pre-computed gates
    T = x_ref.shape[0]
    H = whh_f_ref.shape[0]            # natural (un-padded) hidden size
    G = 4 * H                         # packed gate width per direction

    # ---- hoisted input projection: one MXU matmul for BOTH directions ------
    pre_ref[...] = (jnp.dot(x_ref[...], wih_all_ref[...],
                            preferred_element_type=jnp.float32)
                    + b_all_ref[...])                          # (T, 8H)

    # De-padded recurrent weights: (32,128) f32 = 4 vregs each -> safe to hoist.
    whh_f = whh_f_ref[...]
    whh_b = whh_b_ref[...]

    # Lane mask selecting the g-gate lanes of the packed 4H gate vector, so the
    # nonlinearities run as two full-vreg EUP ops instead of per-gate slices.
    lane = lax.broadcasted_iota(jnp.int32, (1, G), 1)
    g_mask = jnp.logical_and(lane >= 2 * H, lane < 3 * H)

    def cell(pre_row, h, c, whh):
        # only h @ whh remains on the serial critical path (single MXU pass)
        gates = pre_row + jnp.dot(h, whh, preferred_element_type=jnp.float32)
        act = jnp.where(g_mask, jnp.tanh(gates), jax.nn.sigmoid(gates))
        c_new = act[:, H:2 * H] * c + act[:, 0:H] * act[:, 2 * H:3 * H]
        h_new = act[:, 3 * H:4 * H] * jnp.tanh(c_new)
        return h_new, c_new

    # loop-carried state lives in registers (tiny: (1, H))
    h_f = jnp.zeros((1, H), jnp.float32)
    c_f = jnp.zeros((1, H), jnp.float32)
    h_b = jnp.zeros((1, H), jnp.float32)
    c_b = jnp.zeros((1, H), jnp.float32)

    # Per-step hidden rows accumulate in registers; packed once at the end.
    feat_f = [None] * T
    feat_b = [None] * T

    # Fused, fully-unrolled time loop (T is small and static): forward step s
    # and backward step T-1-s are independent chains -> their MXU / VPU / EUP
    # work interleaves in the same VLIW bundles.
    for s in range(T):
        tf = s
        tb = T - 1 - s
        h_f, c_f = cell(pre_ref[tf:tf + 1, 0:G], h_f, c_f, whh_f)
        h_b, c_b = cell(pre_ref[tb:tb + 1, G:2 * G], h_b, c_b, whh_b)
        feat_f[tf] = h_f
        feat_b[tb] = h_b

    # Register-level packing of the head features: (T, 2H), no VMEM round-trip.
    feat = jnp.concatenate(
        [jnp.concatenate([feat_f[t], feat_b[t]], axis=1) for t in range(T)],
        axis=0)

    # ---- dense head (Dropout is identity at inference) ---------------------
    hid = jnp.maximum(
        jnp.dot(feat, w1_ref[...], preferred_element_type=jnp.float32)
        + b1_ref[...], 0.0)                                    # (T, DH)
    out_ref[...] = (jnp.dot(hid, w2_ref[...],
                            preferred_element_type=jnp.float32)
                    + b2_ref[...])                             # (T, OUTP)


def _pack_params(params, out_pad):
    """Pack PyTorch-layout weights for the kernel (no gate padding needed)."""
    wih_all = jnp.concatenate([params["wih_f"], params["wih_b"]], axis=1)
    b_all = jnp.concatenate([params["b_f"], params["b_b"]], axis=1)
    out_size = params["w2"].shape[1]
    w2_p = jnp.pad(params["w2"], ((0, 0), (0, out_pad - out_size)))
    b2_p = jnp.pad(params["b2"], ((0, 0), (0, out_pad - out_size)))
    return (wih_all, b_all, params["whh_f"], params["whh_b"],
            params["w1"], params["b1"], w2_p, b2_p)


def bilstm_forward(x, params):
    T, B, D = x.shape
    H = params["whh_f"].shape[0]
    out_size = params["w2"].shape[1]
    out_pad = _round_up(out_size, LANE)

    packed = _pack_params(params, out_pad)
    # Only batch row B-1 feeds the head (lstm_out[:, -1, :]); LSTM state is
    # independent per batch row, so drop the dead rows before the kernel.
    x_last = x[:, B - 1, :]            # (T, D)

    kernel = pl.pallas_call(
        bilstm_dense_kernel,
        out_shape=jax.ShapeDtypeStruct((T, out_pad), jnp.float32),
        in_specs=[pl.BlockSpec(memory_space=pltpu.MemorySpace.VMEM)] * 9,
        out_specs=pl.BlockSpec(memory_space=pltpu.MemorySpace.VMEM),
        scratch_shapes=[
            pltpu.VMEM((T, 8 * H), jnp.float32),   # hoisted pre-gates
        ],
    )
    out = kernel(x_last, *packed)
    return out[:, :out_size]           # drop lane padding of the tiny head


def reference(x, p):
    """Pure-JAX reference with identical semantics (for validation)."""
    T, B, _ = x.shape
    H = p["whh_f"].shape[0]

    def run(wih, whh, b, xs):
        def step(carry, x_t):
            h, c = carry
            gates = x_t @ wih + h @ whh + b[0]
            i, f, g, o = jnp.split(gates, 4, axis=-1)
            i = jax.nn.sigmoid(i); f = jax.nn.sigmoid(f)
            g = jnp.tanh(g);       o = jax.nn.sigmoid(o)
            c = f * c + i * g
            h = o * jnp.tanh(c)
            return (h, c), h
        init = (jnp.zeros((B, H), jnp.float32), jnp.zeros((B, H), jnp.float32))
        _, hs = lax.scan(step, init, xs)
        return hs

    hf = run(p["wih_f"], p["whh_f"], p["b_f"], x)
    hb = run(p["wih_b"], p["whh_b"], p["b_b"], x[::-1])[::-1]
    lstm_out = jnp.concatenate([hf, hb], axis=-1)   # (T, B, 2H)
    feat = lstm_out[:, -1, :]                       # (T, 2H)  last BATCH row
    hid = jnp.maximum(feat @ p["w1"] + p["b1"][0], 0.0)
    return hid @ p["w2"] + p["b2"][0]


if __name__ == "__main__":
    # Small shapes consistent with the module (constructor args are free).
    T, B = 8, 2             # seq_len, batch
    D, H = 64, 32           # input_size, hidden_size
    DENSE_H, OUT = 128, 13  # dense hidden (fixed by module), output_size

    key = jax.random.PRNGKey(0)
    ks = jax.random.split(key, 12)
    s = 0.1
    params = {
        # LSTM forward direction (pre-transposed: (in, 4H)), gate order i,f,g,o
        "wih_f": jax.random.normal(ks[0], (D, 4 * H), jnp.float32) * s,
        "whh_f": jax.random.normal(ks[1], (H, 4 * H), jnp.float32) * s,
        "b_f":   jax.random.normal(ks[2], (1, 4 * H), jnp.float32) * s,  # b_ih+b_hh
        # LSTM backward direction
        "wih_b": jax.random.normal(ks[3], (D, 4 * H), jnp.float32) * s,
        "whh_b": jax.random.normal(ks[4], (H, 4 * H), jnp.float32) * s,
        "b_b":   jax.random.normal(ks[5], (1, 4 * H), jnp.float32) * s,
        # dense head
        "w1": jax.random.normal(ks[6], (2 * H, DENSE_H), jnp.float32) * s,
        "b1": jax.random.normal(ks[7], (1, DENSE_H), jnp.float32) * s,
        "w2": jax.random.normal(ks[8], (DENSE_H, OUT), jnp.float32) * s,
        "b2": jax.random.normal(ks[9], (1, OUT), jnp.float32) * s,
    }
    x = jax.random.normal(ks[11], (T, B, D), jnp.float32)

    out = bilstm_forward(x, params)
    jax.block_until_ready(out)

    ref = reference(x, params)
    np.testing.assert_allclose(np.asarray(out), np.asarray(ref),
                               rtol=2e-3, atol=2e-3)
    print("KERNEL_OK")
</pallas_src>

<mosaic_0001>
module attributes {stable_mosaic.version = 11 : i64} {
  func.func @bilstm_dense_kernel(%arg0: memref<8x64xf32, #tpu.memory_space<vmem>>, %arg1: memref<64x256xf32, #tpu.memory_space<vmem>>, %arg2: memref<1x256xf32, #tpu.memory_space<vmem>>, %arg3: memref<32x128xf32, #tpu.memory_space<vmem>>, %arg4: memref<32x128xf32, #tpu.memory_space<vmem>>, %arg5: memref<64x128xf32, #tpu.memory_space<vmem>>, %arg6: memref<1x128xf32, #tpu.memory_space<vmem>>, %arg7: memref<128x128xf32, #tpu.memory_space<vmem>>, %arg8: memref<1x128xf32, #tpu.memory_space<vmem>>, %arg9: memref<8x128xf32, #tpu.memory_space<vmem>>, %arg10: memref<8x256xf32, #tpu.memory_space<vmem>>) attributes {dimension_semantics = [], scalar_prefetch = 0 : i64, scratch_operands = 1 : i64, tpu.core_type = #tpu.core_type<tc>} {
    %c0 = arith.constant 0 : index
    %c0_0 = arith.constant 0 : index
    %0 = vector.load %arg0[%c0, %c0_0] : memref<8x64xf32, #tpu.memory_space<vmem>>, vector<8x64xf32>
    %c0_1 = arith.constant 0 : index
    %c0_2 = arith.constant 0 : index
    %1 = vector.load %arg1[%c0_1, %c0_2] : memref<64x256xf32, #tpu.memory_space<vmem>>, vector<64x256xf32>
    %cst = arith.constant dense<0.000000e+00> : vector<8x256xf32>
    %2 = tpu.matmul %0, %1, %cst {dimension_numbers = #tpu.dot_dimension_numbers<[1], [0], [0], [1], [0, 0, 1, 1], [], []>} : vector<8x64xf32>, vector<64x256xf32>, vector<8x256xf32> -> vector<8x256xf32>
    %c0_3 = arith.constant 0 : index
    %c0_4 = arith.constant 0 : index
    %3 = vector.load %arg2[%c0_3, %c0_4] : memref<1x256xf32, #tpu.memory_space<vmem>>, vector<1x256xf32>
    %4 = vector.broadcast %3 : vector<1x256xf32> to vector<8x256xf32>
    %5 = arith.addf %2, %4 : vector<8x256xf32>
    %c0_5 = arith.constant 0 : index
    %c0_6 = arith.constant 0 : index
    %6 = vector.load %arg10[%c0_5, %c0_6] : memref<8x256xf32, #tpu.memory_space<vmem>>, vector<8x256xf32>
    tpu.vector_store %arg10[%c0_5, %c0_6], %5 {strides = array<i32>} : memref<8x256xf32, #tpu.memory_space<vmem>>, vector<8x256xf32>,
    %c0_7 = arith.constant 0 : index
    %c0_8 = arith.constant 0 : index
    %7 = vector.load %arg3[%c0_7, %c0_8] : memref<32x128xf32, #tpu.memory_space<vmem>>, vector<32x128xf32>
    %c0_9 = arith.constant 0 : index
    %c0_10 = arith.constant 0 : index
    %8 = vector.load %arg4[%c0_9, %c0_10] : memref<32x128xf32, #tpu.memory_space<vmem>>, vector<32x128xf32>
    %9 = tpu.iota {dimensions = array<i32: 1>} : vector<1x128xi32>
    %c64_i32 = arith.constant 64 : i32
    %10 = vector.broadcast %c64_i32 : i32 to vector<1x128xi32>
    %11 = arith.cmpi sge, %9, %10 : vector<1x128xi32>
    %c96_i32 = arith.constant 96 : i32
    %12 = vector.broadcast %c96_i32 : i32 to vector<1x128xi32>
    %13 = arith.cmpi slt, %9, %12 : vector<1x128xi32>
    %14 = arith.andi %11, %13 : vector<1x128xi1>
    %cst_11 = arith.constant 0.000000e+00 : f32
    %15 = vector.broadcast %cst_11 : f32 to vector<1x32xf32>
    %cst_12 = arith.constant 0.000000e+00 : f32
    %16 = vector.broadcast %cst_12 : f32 to vector<1x32xf32>
    %cst_13 = arith.constant 0.000000e+00 : f32
    %17 = vector.broadcast %cst_13 : f32 to vector<1x32xf32>
    %cst_14 = arith.constant 0.000000e+00 : f32
    %18 = vector.broadcast %cst_14 : f32 to vector<1x32xf32>
    %c0_15 = arith.constant 0 : index
    %c0_16 = arith.constant 0 : index
    %19 = vector.load %arg10[%c0_15, %c0_16] : memref<8x256xf32, #tpu.memory_space<vmem>>, vector<1x128xf32>
    %cst_17 = arith.constant dense<0.000000e+00> : vector<1x128xf32>
    %20 = tpu.matmul %15, %7, %cst_17 {dimension_numbers = #tpu.dot_dimension_numbers<[1], [0], [0], [1], [0, 0, 1, 1], [], []>} : vector<1x32xf32>, vector<32x128xf32>, vector<1x128xf32> -> vector<1x128xf32>
    %21 = arith.addf %19, %20 : vector<1x128xf32>
    %22 = math.tanh %21 : vector<1x128xf32>
    %23 = arith.negf %21 : vector<1x128xf32>
    %24 = math.exp %23 : vector<1x128xf32>
    %cst_18 = arith.constant 1.000000e+00 : f32
    %25 = vector.broadcast %cst_18 : f32 to vector<1x128xf32>
    %26 = arith.addf %25, %24 : vector<1x128xf32>
    %27 = arith.divf %25, %26 : vector<1x128xf32>
    %28 = arith.select %14, %22, %27 : vector<1x128xi1>, vector<1x128xf32>
    %29 = vector.extract_strided_slice %28 {offsets = [0, 32], sizes = [1, 32], strides = [1, 1]} : vector<1x128xf32> to vector<1x32xf32>
    %30 = arith.mulf %29, %16 : vector<1x32xf32>
    %31 = vector.extract_strided_slice %28 {offsets = [0, 0], sizes = [1, 32], strides = [1, 1]} : vector<1x128xf32> to vector<1x32xf32>
    %32 = vector.extract_strided_slice %28 {offsets = [0, 64], sizes = [1, 32], strides = [1, 1]} : vector<1x128xf32> to vector<1x32xf32>
    %33 = arith.mulf %31, %32 : vector<1x32xf32>
    %34 = arith.addf %30, %33 : vector<1x32xf32>
    %35 = vector.extract_strided_slice %28 {offsets = [0, 96], sizes = [1, 32], strides = [1, 1]} : vector<1x128xf32> to vector<1x32xf32>
    %36 = math.tanh %34 : vector<1x32xf32>
    %37 = arith.mulf %35, %36 : vector<1x32xf32>
    %c7 = arith.constant 7 : index
    %c128 = arith.constant 128 : index
    %38 = vector.load %arg10[%c7, %c128] : memref<8x256xf32, #tpu.memory_space<vmem>>, vector<1x128xf32>
    %cst_19 = arith.constant dense<0.000000e+00> : vector<1x128xf32>
    %39 = tpu.matmul %17, %8, %cst_19 {dimension_numbers = #tpu.dot_dimension_numbers<[1], [0], [0], [1], [0, 0, 1, 1], [], []>} : vector<1x32xf32>, vector<32x128xf32>, vector<1x128xf32> -> vector<1x128xf32>
    %40 = arith.addf %38, %39 : vector<1x128xf32>
    %41 = math.tanh %40 : vector<1x128xf32>
    %42 = arith.negf %40 : vector<1x128xf32>
    %43 = math.exp %42 : vector<1x128xf32>
    %cst_20 = arith.constant 1.000000e+00 : f32
    %44 = vector.broadcast %cst_20 : f32 to vector<1x128xf32>
    %45 = arith.addf %44, %43 : vector<1x128xf32>
    %46 = arith.divf %44, %45 : vector<1x128xf32>
    %47 = arith.select %14, %41, %46 : vector<1x128xi1>, vector<1x128xf32>
    %48 = vector.extract_strided_slice %47 {offsets = [0, 32], sizes = [1, 32], strides = [1, 1]} : vector<1x128xf32> to vector<1x32xf32>
    %49 = arith.mulf %48, %18 : vector<1x32xf32>
    %50 = vector.extract_strided_slice %47 {offsets = [0, 0], sizes = [1, 32], strides = [1, 1]} : vector<1x128xf32> to vector<1x32xf32>
    %51 = vector.extract_strided_slice %47 {offsets = [0, 64], sizes = [1, 32], strides = [1, 1]} : vector<1x128xf32> to vector<1x32xf32>
    %52 = arith.mulf %50, %51 : vector<1x32xf32>
    %53 = arith.addf %49, %52 : vector<1x32xf32>
    %54 = vector.extract_strided_slice %47 {offsets = [0, 96], sizes = [1, 32], strides = [1, 1]} : vector<1x128xf32> to vector<1x32xf32>
    %55 = math.tanh %53 : vector<1x32xf32>
    %56 = arith.mulf %54, %55 : vector<1x32xf32>
    %c1 = arith.constant 1 : index
    %c0_21 = arith.constant 0 : index
    %57 = vector.load %arg10[%c1, %c0_21] : memref<8x256xf32, #tpu.memory_space<vmem>>, vector<1x128xf32>
    %cst_22 = arith.constant dense<0.000000e+00> : vector<1x128xf32>
    %58 = tpu.matmul %37, %7, %cst_22 {dimension_numbers = #tpu.dot_dimension_numbers<[1], [0], [0], [1], [0, 0, 1, 1], [], []>} : vector<1x32xf32>, vector<32x128xf32>, vector<1x128xf32> -> vector<1x128xf32>
    %59 = arith.addf %57, %58 : vector<1x128xf32>
    %60 = math.tanh %59 : vector<1x128xf32>
    %61 = arith.negf %59 : vector<1x128xf32>
    %62 = math.exp %61 : vector<1x128xf32>
    %cst_23 = arith.constant 1.000000e+00 : f32
    %63 = vector.broadcast %cst_23 : f32 to vector<1x128xf32>
    %64 = arith.addf %63, %62 : vector<1x128xf32>
    %65 = arith.divf %63, %64 : vector<1x128xf32>
    %66 = arith.select %14, %60, %65 : vector<1x128xi1>, vector<1x128xf32>
    %67 = vector.extract_strided_slice %66 {offsets = [0, 32], sizes = [1, 32], strides = [1, 1]} : vector<1x128xf32> to vector<1x32xf32>
    %68 = arith.mulf %67, %34 : vector<1x32xf32>
    %69 = vector.extract_strided_slice %66 {offsets = [0, 0], sizes = [1, 32], strides = [1, 1]} : vector<1x128xf32> to vector<1x32xf32>
    %70 = vector.extract_strided_slice %66 {offsets = [0, 64], sizes = [1, 32], strides = [1, 1]} : vector<1x128xf32> to vector<1x32xf32>
    %71 = arith.mulf %69, %70 : vector<1x32xf32>
    %72 = arith.addf %68, %71 : vector<1x32xf32>
    %73 = vector.extract_strided_slice %66 {offsets = [0, 96], sizes = [1, 32], strides = [1, 1]} : vector<1x128xf32> to vector<1x32xf32>
    %74 = math.tanh %72 : vector<1x32xf32>
    %75 = arith.mulf %73, %74 : vector<1x32xf32>
    %c6 = arith.constant 6 : index
    %c128_24 = arith.constant 128 : index
    %76 = vector.load %arg10[%c6, %c128_24] : memref<8x256xf32, #tpu.memory_space<vmem>>, vector<1x128xf32>
    %cst_25 = arith.constant dense<0.000000e+00> : vector<1x128xf32>
    %77 = tpu.matmul %56, %8, %cst_25 {dimension_numbers = #tpu.dot_dimension_numbers<[1], [0], [0], [1], [0, 0, 1, 1], [], []>} : vector<1x32xf32>, vector<32x128xf32>, vector<1x128xf32> -> vector<1x128xf32>
    %78 = arith.addf %76, %77 : vector<1x128xf32>
    %79 = math.tanh %78 : vector<1x128xf32>
    %80 = arith.negf %78 : vector<1x128xf32>
    %81 = math.exp %80 : vector<1x128xf32>
    %cst_26 = arith.constant 1.000000e+00 : f32
    %82 = vector.broadcast %cst_26 : f32 to vector<1x128xf32>
    %83 = arith.addf %82, %81 : vector<1x128xf32>
    %84 = arith.divf %82, %83 : vector<1x128xf32>
    %85 = arith.select %14, %79, %84 : vector<1x128xi1>, vector<1x128xf32>
    %86 = vector.extract_strided_slice %85 {offsets = [0, 32], sizes = [1, 32], strides = [1, 1]} : vector<1x128xf32> to vector<1x32xf32>
    %87 = arith.mulf %86, %53 : vector<1x32xf32>
    %88 = vector.extract_strided_slice %85 {offsets = [0, 0], sizes = [1, 32], strides = [1, 1]} : vector<1x128xf32> to vector<1x32xf32>
    %89 = vector.extract_strided_slice %85 {offsets = [0, 64], sizes = [1, 32], strides = [1, 1]} : vector<1x128xf32> to vector<1x32xf32>
    %90 = arith.mulf %88, %89 : vector<1x32xf32>
    %91 = arith.addf %87, %90 : vector<1x32xf32>
    %92 = vector.extract_strided_slice %85 {offsets = [0, 96], sizes = [1, 32], strides = [1, 1]} : vector<1x128xf32> to vector<1x32xf32>
    %93 = math.tanh %91 : vector<1x32xf32>
    %94 = arith.mulf %92, %93 : vector<1x32xf32>
    %c2 = arith.constant 2 : index
    %c0_27 = arith.constant 0 : index
    %95 = vector.load %arg10[%c2, %c0_27] : memref<8x256xf32, #tpu.memory_space<vmem>>, vector<1x128xf32>
    %cst_28 = arith.constant dense<0.000000e+00> : vector<1x128xf32>
    %96 = tpu.matmul %75, %7, %cst_28 {dimension_numbers = #tpu.dot_dimension_numbers<[1], [0], [0], [1], [0, 0, 1, 1], [], []>} : vector<1x32xf32>, vector<32x128xf32>, vector<1x128xf32> -> vector<1x128xf32>
    %97 = arith.addf %95, %96 : vector<1x128xf32>
    %98 = math.tanh %97 : vector<1x128xf32>
    %99 = arith.negf %97 : vector<1x128xf32>
    %100 = math.exp %99 : vector<1x128xf32>
    %cst_29 = arith.constant 1.000000e+00 : f32
    %101 = vector.broadcast %cst_29 : f32 to vector<1x128xf32>
    %102 = arith.addf %101, %100 : vector<1x128xf32>
    %103 = arith.divf %101, %102 : vector<1x128xf32>
    %104 = arith.select %14, %98, %103 : vector<1x128xi1>, vector<1x128xf32>
    %105 = vector.extract_strided_slice %104 {offsets = [0, 32], sizes = [1, 32], strides = [1, 1]} : vector<1x128xf32> to vector<1x32xf32>
    %106 = arith.mulf %105, %72 : vector<1x32xf32>
    %107 = vector.extract_strided_slice %104 {offsets = [0, 0], sizes = [1, 32], strides = [1, 1]} : vector<1x128xf32> to vector<1x32xf32>
    %108 = vector.extract_strided_slice %104 {offsets = [0, 64], sizes = [1, 32], strides = [1, 1]} : vector<1x128xf32> to vector<1x32xf32>
    %109 = arith.mulf %107, %108 : vector<1x32xf32>
    %110 = arith.addf %106, %109 : vector<1x32xf32>
    %111 = vector.extract_strided_slice %104 {offsets = [0, 96], sizes = [1, 32], strides = [1, 1]} : vector<1x128xf32> to vector<1x32xf32>
    %112 = math.tanh %110 : vector<1x32xf32>
    %113 = arith.mulf %111, %112 : vector<1x32xf32>
    %c5 = arith.constant 5 : index
    %c128_30 = arith.constant 128 : index
    %114 = vector.load %arg10[%c5, %c128_30] : memref<8x256xf32, #tpu.memory_space<vmem>>, vector<1x128xf32>
    %cst_31 = arith.constant dense<0.000000e+00> : vector<1x128xf32>
    %115 = tpu.matmul %94, %8, %cst_31 {dimension_numbers = #tpu.dot_dimension_numbers<[1], [0], [0], [1], [0, 0, 1, 1], [], []>} : vector<1x32xf32>, vector<32x128xf32>, vector<1x128xf32> -> vector<1x128xf32>
    %116 = arith.addf %114, %115 : vector<1x128xf32>
    %117 = math.tanh %116 : vector<1x128xf32>
    %118 = arith.negf %116 : vector<1x128xf32>
    %119 = math.exp %118 : vector<1x128xf32>
    %cst_32 = arith.constant 1.000000e+00 : f32
    %120 = vector.broadcast %cst_32 : f32 to vector<1x128xf32>
    %121 = arith.addf %120, %119 : vector<1x128xf32>
    %122 = arith.divf %120, %121 : vector<1x128xf32>
    %123 = arith.select %14, %117, %122 : vector<1x128xi1>, vector<1x128xf32>
    %124 = vector.extract_strided_slice %123 {offsets = [0, 32], sizes = [1, 32], strides = [1, 1]} : vector<1x128xf32> to vector<1x32xf32>
    %125 = arith.mulf %124, %91 : vector<1x32xf32>
    %126 = vector.extract_strided_slice %123 {offsets = [0, 0], sizes = [1, 32], strides = [1, 1]} : vector<1x128xf32> to vector<1x32xf32>
    %127 = vector.extract_strided_slice %123 {offsets = [0, 64], sizes = [1, 32], strides = [1, 1]} : vector<1x128xf32> to vector<1x32xf32>
    %128 = arith.mulf %126, %127 : vector<1x32xf32>
    %129 = arith.addf %125, %128 : vector<1x32xf32>
    %130 = vector.extract_strided_slice %123 {offsets = [0, 96], sizes = [1, 32], strides = [1, 1]} : vector<1x128xf32> to vector<1x32xf32>
    %131 = math.tanh %129 : vector<1x32xf32>
    %132 = arith.mulf %130, %131 : vector<1x32xf32>
    %c3 = arith.constant 3 : index
    %c0_33 = arith.constant 0 : index
    %133 = vector.load %arg10[%c3, %c0_33] : memref<8x256xf32, #tpu.memory_space<vmem>>, vector<1x128xf32>
    %cst_34 = arith.constant dense<0.000000e+00> : vector<1x128xf32>
    %134 = tpu.matmul %113, %7, %cst_34 {dimension_numbers = #tpu.dot_dimension_numbers<[1], [0], [0], [1], [0, 0, 1, 1], [], []>} : vector<1x32xf32>, vector<32x128xf32>, vector<1x128xf32> -> vector<1x128xf32>
    %135 = arith.addf %133, %134 : vector<1x128xf32>
    %136 = math.tanh %135 : vector<1x128xf32>
    %137 = arith.negf %135 : vector<1x128xf32>
    %138 = math.exp %137 : vector<1x128xf32>
    %cst_35 = arith.constant 1.000000e+00 : f32
    %139 = vector.broadcast %cst_35 : f32 to vector<1x128xf32>
    %140 = arith.addf %139, %138 : vector<1x128xf32>
    %141 = arith.divf %139, %140 : vector<1x128xf32>
    %142 = arith.select %14, %136, %141 : vector<1x128xi1>, vector<1x128xf32>
    %143 = vector.extract_strided_slice %142 {offsets = [0, 32], sizes = [1, 32], strides = [1, 1]} : vector<1x128xf32> to vector<1x32xf32>
    %144 = arith.mulf %143, %110 : vector<1x32xf32>
    %145 = vector.extract_strided_slice %142 {offsets = [0, 0], sizes = [1, 32], strides = [1, 1]} : vector<1x128xf32> to vector<1x32xf32>
    %146 = vector.extract_strided_slice %142 {offsets = [0, 64], sizes = [1, 32], strides = [1, 1]} : vector<1x128xf32> to vector<1x32xf32>
    %147 = arith.mulf %145, %146 : vector<1x32xf32>
    %148 = arith.addf %144, %147 : vector<1x32xf32>
    %149 = vector.extract_strided_slice %142 {offsets = [0, 96], sizes = [1, 32], strides = [1, 1]} : vector<1x128xf32> to vector<1x32xf32>
    %150 = math.tanh %148 : vector<1x32xf32>
    %151 = arith.mulf %149, %150 : vector<1x32xf32>
    %c4 = arith.constant 4 : index
    %c128_36 = arith.constant 128 : index
    %152 = vector.load %arg10[%c4, %c128_36] : memref<8x256xf32, #tpu.memory_space<vmem>>, vector<1x128xf32>
    %cst_37 = arith.constant dense<0.000000e+00> : vector<1x128xf32>
    %153 = tpu.matmul %132, %8, %cst_37 {dimension_numbers = #tpu.dot_dimension_numbers<[1], [0], [0], [1], [0, 0, 1, 1], [], []>} : vector<1x32xf32>, vector<32x128xf32>, vector<1x128xf32> -> vector<1x128xf32>
    %154 = arith.addf %152, %153 : vector<1x128xf32>
    %155 = math.tanh %154 : vector<1x128xf32>
    %156 = arith.negf %154 : vector<1x128xf32>
    %157 = math.exp %156 : vector<1x128xf32>
    %cst_38 = arith.constant 1.000000e+00 : f32
    %158 = vector.broadcast %cst_38 : f32 to vector<1x128xf32>
    %159 = arith.addf %158, %157 : vector<1x128xf32>
    %160 = arith.divf %158, %159 : vector<1x128xf32>
    %161 = arith.select %14, %155, %160 : vector<1x128xi1>, vector<1x128xf32>
    %162 = vector.extract_strided_slice %161 {offsets = [0, 32], sizes = [1, 32], strides = [1, 1]} : vector<1x128xf32> to vector<1x32xf32>
    %163 = arith.mulf %162, %129 : vector<1x32xf32>
    %164 = vector.extract_strided_slice %161 {offsets = [0, 0], sizes = [1, 32], strides = [1, 1]} : vector<1x128xf32> to vector<1x32xf32>
    %165 = vector.extract_strided_slice %161 {offsets = [0, 64], sizes = [1, 32], strides = [1, 1]} : vector<1x128xf32> to vector<1x32xf32>
    %166 = arith.mulf %164, %165 : vector<1x32xf32>
    %167 = arith.addf %163, %166 : vector<1x32xf32>
    %168 = vector.extract_strided_slice %161 {offsets = [0, 96], sizes = [1, 32], strides = [1, 1]} : vector<1x128xf32> to vector<1x32xf32>
    %169 = math.tanh %167 : vector<1x32xf32>
    %170 = arith.mulf %168, %169 : vector<1x32xf32>
    %c4_39 = arith.constant 4 : index
    %c0_40 = arith.constant 0 : index
    %171 = vector.load %arg10[%c4_39, %c0_40] : memref<8x256xf32, #tpu.memory_space<vmem>>, vector<1x128xf32>
    %cst_41 = arith.constant dense<0.000000e+00> : vector<1x128xf32>
    %172 = tpu.matmul %151, %7, %cst_41 {dimension_numbers = #tpu.dot_dimension_numbers<[1], [0], [0], [1], [0, 0, 1, 1], [], []>} : vector<1x32xf32>, vector<32x128xf32>, vector<1x128xf32> -> vector<1x128xf32>
    %173 = arith.addf %171, %172 : vector<1x128xf32>
    %174 = math.tanh %173 : vector<1x128xf32>
    %175 = arith.negf %173 : vector<1x128xf32>
    %176 = math.exp %175 : vector<1x128xf32>
    %cst_42 = arith.constant 1.000000e+00 : f32
    %177 = vector.broadcast %cst_42 : f32 to vector<1x128xf32>
    %178 = arith.addf %177, %176 : vector<1x128xf32>
    %179 = arith.divf %177, %178 : vector<1x128xf32>
    %180 = arith.select %14, %174, %179 : vector<1x128xi1>, vector<1x128xf32>
    %181 = vector.extract_strided_slice %180 {offsets = [0, 32], sizes = [1, 32], strides = [1, 1]} : vector<1x128xf32> to vector<1x32xf32>
    %182 = arith.mulf %181, %148 : vector<1x32xf32>
    %183 = vector.extract_strided_slice %180 {offsets = [0, 0], sizes = [1, 32], strides = [1, 1]} : vector<1x128xf32> to vector<1x32xf32>
    %184 = vector.extract_strided_slice %180 {offsets = [0, 64], sizes = [1, 32], strides = [1, 1]} : vector<1x128xf32> to vector<1x32xf32>
    %185 = arith.mulf %183, %184 : vector<1x32xf32>
    %186 = arith.addf %182, %185 : vector<1x32xf32>
    %187 = vector.extract_strided_slice %180 {offsets = [0, 96], sizes = [1, 32], strides = [1, 1]} : vector<1x128xf32> to vector<1x32xf32>
    %188 = math.tanh %186 : vector<1x32xf32>
    %189 = arith.mulf %187, %188 : vector<1x32xf32>
    %c3_43 = arith.constant 3 : index
    %c128_44 = arith.constant 128 : index
    %190 = vector.load %arg10[%c3_43, %c128_44] : memref<8x256xf32, #tpu.memory_space<vmem>>, vector<1x128xf32>
    %cst_45 = arith.constant dense<0.000000e+00> : vector<1x128xf32>
    %191 = tpu.matmul %170, %8, %cst_45 {dimension_numbers = #tpu.dot_dimension_numbers<[1], [0], [0], [1], [0, 0, 1, 1], [], []>} : vector<1x32xf32>, vector<32x128xf32>, vector<1x128xf32> -> vector<1x128xf32>
    %192 = arith.addf %190, %191 : vector<1x128xf32>
    %193 = math.tanh %192 : vector<1x128xf32>
    %194 = arith.negf %192 : vector<1x128xf32>
    %195 = math.exp %194 : vector<1x128xf32>
    %cst_46 = arith.constant 1.000000e+00 : f32
    %196 = vector.broadcast %cst_46 : f32 to vector<1x128xf32>
    %197 = arith.addf %196, %195 : vector<1x128xf32>
    %198 = arith.divf %196, %197 : vector<1x128xf32>
    %199 = arith.select %14, %193, %198 : vector<1x128xi1>, vector<1x128xf32>
    %200 = vector.extract_strided_slice %199 {offsets = [0, 32], sizes = [1, 32], strides = [1, 1]} : vector<1x128xf32> to vector<1x32xf32>
    %201 = arith.mulf %200, %167 : vector<1x32xf32>
    %202 = vector.extract_strided_slice %199 {offsets = [0, 0], sizes = [1, 32], strides = [1, 1]} : vector<1x128xf32> to vector<1x32xf32>
    %203 = vector.extract_strided_slice %199 {offsets = [0, 64], sizes = [1, 32], strides = [1, 1]} : vector<1x128xf32> to vector<1x32xf32>
    %204 = arith.mulf %202, %203 : vector<1x32xf32>
    %205 = arith.addf %201, %204 : vector<1x32xf32>
    %206 = vector.extract_strided_slice %199 {offsets = [0, 96], sizes = [1, 32], strides = [1, 1]} : vector<1x128xf32> to vector<1x32xf32>
    %207 = math.tanh %205 : vector<1x32xf32>
    %208 = arith.mulf %206, %207 : vector<1x32xf32>
    %c5_47 = arith.constant 5 : index
    %c0_48 = arith.constant 0 : index
    %209 = vector.load %arg10[%c5_47, %c0_48] : memref<8x256xf32, #tpu.memory_space<vmem>>, vector<1x128xf32>
    %cst_49 = arith.constant dense<0.000000e+00> : vector<1x128xf32>
    %210 = tpu.matmul %189, %7, %cst_49 {dimension_numbers = #tpu.dot_dimension_numbers<[1], [0], [0], [1], [0, 0, 1, 1], [], []>} : vector<1x32xf32>, vector<32x128xf32>, vector<1x128xf32> -> vector<1x128xf32>
    %211 = arith.addf %209, %210 : vector<1x128xf32>
    %212 = math.tanh %211 : vector<1x128xf32>
    %213 = arith.negf %211 : vector<1x128xf32>
    %214 = math.exp %213 : vector<1x128xf32>
    %cst_50 = arith.constant 1.000000e+00 : f32
    %215 = vector.broadcast %cst_50 : f32 to vector<1x128xf32>
    %216 = arith.addf %215, %214 : vector<1x128xf32>
    %217 = arith.divf %215, %216 : vector<1x128xf32>
    %218 = arith.select %14, %212, %217 : vector<1x128xi1>, vector<1x128xf32>
    %219 = vector.extract_strided_slice %218 {offsets = [0, 32], sizes = [1, 32], strides = [1, 1]} : vector<1x128xf32> to vector<1x32xf32>
    %220 = arith.mulf %219, %186 : vector<1x32xf32>
    %221 = vector.extract_strided_slice %218 {offsets = [0, 0], sizes = [1, 32], strides = [1, 1]} : vector<1x128xf32> to vector<1x32xf32>
    %222 = vector.extract_strided_slice %218 {offsets = [0, 64], sizes = [1, 32], strides = [1, 1]} : vector<1x128xf32> to vector<1x32xf32>
    %223 = arith.mulf %221, %222 : vector<1x32xf32>
    %224 = arith.addf %220, %223 : vector<1x32xf32>
    %225 = vector.extract_strided_slice %218 {offsets = [0, 96], sizes = [1, 32], strides = [1, 1]} : vector<1x128xf32> to vector<1x32xf32>
    %226 = math.tanh %224 : vector<1x32xf32>
    %227 = arith.mulf %225, %226 : vector<1x32xf32>
    %c2_51 = arith.constant 2 : index
    %c128_52 = arith.constant 128 : index
    %228 = vector.load %arg10[%c2_51, %c128_52] : memref<8x256xf32, #tpu.memory_space<vmem>>, vector<1x128xf32>
    %cst_53 = arith.constant dense<0.000000e+00> : vector<1x128xf32>
    %229 = tpu.matmul %208, %8, %cst_53 {dimension_numbers = #tpu.dot_dimension_numbers<[1], [0], [0], [1], [0, 0, 1, 1], [], []>} : vector<1x32xf32>, vector<32x128xf32>, vector<1x128xf32> -> vector<1x128xf32>
    %230 = arith.addf %228, %229 : vector<1x128xf32>
    %231 = math.tanh %230 : vector<1x128xf32>
    %232 = arith.negf %230 : vector<1x128xf32>
    %233 = math.exp %232 : vector<1x128xf32>
    %cst_54 = arith.constant 1.000000e+00 : f32
    %234 = vector.broadcast %cst_54 : f32 to vector<1x128xf32>
    %235 = arith.addf %234, %233 : vector<1x128xf32>
    %236 = arith.divf %234, %235 : vector<1x128xf32>
    %237 = arith.select %14, %231, %236 : vector<1x128xi1>, vector<1x128xf32>
    %238 = vector.extract_strided_slice %237 {offsets = [0, 32], sizes = [1, 32], strides = [1, 1]} : vector<1x128xf32> to vector<1x32xf32>
    %239 = arith.mulf %238, %205 : vector<1x32xf32>
    %240 = vector.extract_strided_slice %237 {offsets = [0, 0], sizes = [1, 32], strides = [1, 1]} : vector<1x128xf32> to vector<1x32xf32>
    %241 = vector.extract_strided_slice %237 {offsets = [0, 64], sizes = [1, 32], strides = [1, 1]} : vector<1x128xf32> to vector<1x32xf32>
    %242 = arith.mulf %240, %241 : vector<1x32xf32>
    %243 = arith.addf %239, %242 : vector<1x32xf32>
    %244 = vector.extract_strided_slice %237 {offsets = [0, 96], sizes = [1, 32], strides = [1, 1]} : vector<1x128xf32> to vector<1x32xf32>
    %245 = math.tanh %243 : vector<1x32xf32>
    %246 = arith.mulf %244, %245 : vector<1x32xf32>
    %c6_55 = arith.constant 6 : index
    %c0_56 = arith.constant 0 : index
    %247 = vector.load %arg10[%c6_55, %c0_56] : memref<8x256xf32, #tpu.memory_space<vmem>>, vector<1x128xf32>
    %cst_57 = arith.constant dense<0.000000e+00> : vector<1x128xf32>
    %248 = tpu.matmul %227, %7, %cst_57 {dimension_numbers = #tpu.dot_dimension_numbers<[1], [0], [0], [1], [0, 0, 1, 1], [], []>} : vector<1x32xf32>, vector<32x128xf32>, vector<1x128xf32> -> vector<1x128xf32>
    %249 = arith.addf %247, %248 : vector<1x128xf32>
    %250 = math.tanh %249 : vector<1x128xf32>
    %251 = arith.negf %249 : vector<1x128xf32>
    %252 = math.exp %251 : vector<1x128xf32>
    %cst_58 = arith.constant 1.000000e+00 : f32
    %253 = vector.broadcast %cst_58 : f32 to vector<1x128xf32>
    %254 = arith.addf %253, %252 : vector<1x128xf32>
    %255 = arith.divf %253, %254 : vector<1x128xf32>
    %256 = arith.select %14, %250, %255 : vector<1x128xi1>, vector<1x128xf32>
    %257 = vector.extract_strided_slice %256 {offsets = [0, 32], sizes = [1, 32], strides = [1, 1]} : vector<1x128xf32> to vector<1x32xf32>
    %258 = arith.mulf %257, %224 : vector<1x32xf32>
    %259 = vector.extract_strided_slice %256 {offsets = [0, 0], sizes = [1, 32], strides = [1, 1]} : vector<1x128xf32> to vector<1x32xf32>
    %260 = vector.extract_strided_slice %256 {offsets = [0, 64], sizes = [1, 32], strides = [1, 1]} : vector<1x128xf32> to vector<1x32xf32>
    %261 = arith.mulf %259, %260 : vector<1x32xf32>
    %262 = arith.addf %258, %261 : vector<1x32xf32>
    %263 = vector.extract_strided_slice %256 {offsets = [0, 96], sizes = [1, 32], strides = [1, 1]} : vector<1x128xf32> to vector<1x32xf32>
    %264 = math.tanh %262 : vector<1x32xf32>
    %265 = arith.mulf %263, %264 : vector<1x32xf32>
    %c1_59 = arith.constant 1 : index
    %c128_60 = arith.constant 128 : index
    %266 = vector.load %arg10[%c1_59, %c128_60] : memref<8x256xf32, #tpu.memory_space<vmem>>, vector<1x128xf32>
    %cst_61 = arith.constant dense<0.000000e+00> : vector<1x128xf32>
    %267 = tpu.matmul %246, %8, %cst_61 {dimension_numbers = #tpu.dot_dimension_numbers<[1], [0], [0], [1], [0, 0, 1, 1], [], []>} : vector<1x32xf32>, vector<32x128xf32>, vector<1x128xf32> -> vector<1x128xf32>
    %268 = arith.addf %266, %267 : vector<1x128xf32>
    %269 = math.tanh %268 : vector<1x128xf32>
    %270 = arith.negf %268 : vector<1x128xf32>
    %271 = math.exp %270 : vector<1x128xf32>
    %cst_62 = arith.constant 1.000000e+00 : f32
    %272 = vector.broadcast %cst_62 : f32 to vector<1x128xf32>
    %273 = arith.addf %272, %271 : vector<1x128xf32>
    %274 = arith.divf %272, %273 : vector<1x128xf32>
    %275 = arith.select %14, %269, %274 : vector<1x128xi1>, vector<1x128xf32>
    %276 = vector.extract_strided_slice %275 {offsets = [0, 32], sizes = [1, 32], strides = [1, 1]} : vector<1x128xf32> to vector<1x32xf32>
    %277 = arith.mulf %276, %243 : vector<1x32xf32>
    %278 = vector.extract_strided_slice %275 {offsets = [0, 0], sizes = [1, 32], strides = [1, 1]} : vector<1x128xf32> to vector<1x32xf32>
    %279 = vector.extract_strided_slice %275 {offsets = [0, 64], sizes = [1, 32], strides = [1, 1]} : vector<1x128xf32> to vector<1x32xf32>
    %280 = arith.mulf %278, %279 : vector<1x32xf32>
    %281 = arith.addf %277, %280 : vector<1x32xf32>
    %282 = vector.extract_strided_slice %275 {offsets = [0, 96], sizes = [1, 32], strides = [1, 1]} : vector<1x128xf32> to vector<1x32xf32>
    %283 = math.tanh %281 : vector<1x32xf32>
    %284 = arith.mulf %282, %283 : vector<1x32xf32>
    %c7_63 = arith.constant 7 : index
    %c0_64 = arith.constant 0 : index
    %285 = vector.load %arg10[%c7_63, %c0_64] : memref<8x256xf32, #tpu.memory_space<vmem>>, vector<1x128xf32>
    %cst_65 = arith.constant dense<0.000000e+00> : vector<1x128xf32>
    %286 = tpu.matmul %265, %7, %cst_65 {dimension_numbers = #tpu.dot_dimension_numbers<[1], [0], [0], [1], [0, 0, 1, 1], [], []>} : vector<1x32xf32>, vector<32x128xf32>, vector<1x128xf32> -> vector<1x128xf32>
    %287 = arith.addf %285, %286 : vector<1x128xf32>
    %288 = math.tanh %287 : vector<1x128xf32>
    %289 = arith.negf %287 : vector<1x128xf32>
    %290 = math.exp %289 : vector<1x128xf32>
    %cst_66 = arith.constant 1.000000e+00 : f32
    %291 = vector.broadcast %cst_66 : f32 to vector<1x128xf32>
    %292 = arith.addf %291, %290 : vector<1x128xf32>
    %293 = arith.divf %291, %292 : vector<1x128xf32>
    %294 = arith.select %14, %288, %293 : vector<1x128xi1>, vector<1x128xf32>
    %295 = vector.extract_strided_slice %294 {offsets = [0, 32], sizes = [1, 32], strides = [1, 1]} : vector<1x128xf32> to vector<1x32xf32>
    %296 = arith.mulf %295, %262 : vector<1x32xf32>
    %297 = vector.extract_strided_slice %294 {offsets = [0, 0], sizes = [1, 32], strides = [1, 1]} : vector<1x128xf32> to vector<1x32xf32>
    %298 = vector.extract_strided_slice %294 {offsets = [0, 64], sizes = [1, 32], strides = [1, 1]} : vector<1x128xf32> to vector<1x32xf32>
    %299 = arith.mulf %297, %298 : vector<1x32xf32>
    %300 = arith.addf %296, %299 : vector<1x32xf32>
    %301 = vector.extract_strided_slice %294 {offsets = [0, 96], sizes = [1, 32], strides = [1, 1]} : vector<1x128xf32> to vector<1x32xf32>
    %302 = math.tanh %300 : vector<1x32xf32>
    %303 = arith.mulf %301, %302 : vector<1x32xf32>
    %c0_67 = arith.constant 0 : index
    %c128_68 = arith.constant 128 : index
    %304 = vector.load %arg10[%c0_67, %c128_68] : memref<8x256xf32, #tpu.memory_space<vmem>>, vector<1x128xf32>
    %cst_69 = arith.constant dense<0.000000e+00> : vector<1x128xf32>
    %305 = tpu.matmul %284, %8, %cst_69 {dimension_numbers = #tpu.dot_dimension_numbers<[1], [0], [0], [1], [0, 0, 1, 1], [], []>} : vector<1x32xf32>, vector<32x128xf32>, vector<1x128xf32> -> vector<1x128xf32>
    %306 = arith.addf %304, %305 : vector<1x128xf32>
    %307 = math.tanh %306 : vector<1x128xf32>
    %308 = arith.negf %306 : vector<1x128xf32>
    %309 = math.exp %308 : vector<1x128xf32>
    %cst_70 = arith.constant 1.000000e+00 : f32
    %310 = vector.broadcast %cst_70 : f32 to vector<1x128xf32>
    %311 = arith.addf %310, %309 : vector<1x128xf32>
    %312 = arith.divf %310, %311 : vector<1x128xf32>
    %313 = arith.select %14, %307, %312 : vector<1x128xi1>, vector<1x128xf32>
    %314 = vector.extract_strided_slice %313 {offsets = [0, 32], sizes = [1, 32], strides = [1, 1]} : vector<1x128xf32> to vector<1x32xf32>
    %315 = arith.mulf %314, %281 : vector<1x32xf32>
    %316 = vector.extract_strided_slice %313 {offsets = [0, 0], sizes = [1, 32], strides = [1, 1]} : vector<1x128xf32> to vector<1x32xf32>
    %317 = vector.extract_strided_slice %313 {offsets = [0, 64], sizes = [1, 32], strides = [1, 1]} : vector<1x128xf32> to vector<1x32xf32>
    %318 = arith.mulf %316, %317 : vector<1x32xf32>
    %319 = arith.addf %315, %318 : vector<1x32xf32>
    %320 = vector.extract_strided_slice %313 {offsets = [0, 96], sizes = [1, 32], strides = [1, 1]} : vector<1x128xf32> to vector<1x32xf32>
    %321 = math.tanh %319 : vector<1x32xf32>
    %322 = arith.mulf %320, %321 : vector<1x32xf32>
    %323 = tpu.concatenate %37, %322 in 1 : vector<1x32xf32>, vector<1x32xf32> -> vector<1x64xf32>
    %324 = tpu.concatenate %75, %284 in 1 : vector<1x32xf32>, vector<1x32xf32> -> vector<1x64xf32>
    %325 = tpu.concatenate %113, %246 in 1 : vector<1x32xf32>, vector<1x32xf32> -> vector<1x64xf32>
    %326 = tpu.concatenate %151, %208 in 1 : vector<1x32xf32>, vector<1x32xf32> -> vector<1x64xf32>
    %327 = tpu.concatenate %189, %170 in 1 : vector<1x32xf32>, vector<1x32xf32> -> vector<1x64xf32>
    %328 = tpu.concatenate %227, %132 in 1 : vector<1x32xf32>, vector<1x32xf32> -> vector<1x64xf32>
    %329 = tpu.concatenate %265, %94 in 1 : vector<1x32xf32>, vector<1x32xf32> -> vector<1x64xf32>
    %330 = tpu.concatenate %303, %56 in 1 : vector<1x32xf32>, vector<1x32xf32> -> vector<1x64xf32>
    %331 = tpu.concatenate %323, %324, %325, %326, %327, %328, %329, %330 in 0 : vector<1x64xf32>, vector<1x64xf32>, vector<1x64xf32>, vector<1x64xf32>, vector<1x64xf32>, vector<1x64xf32>, vector<1x64xf32>, vector<1x64xf32> -> vector<8x64xf32>
    %c0_71 = arith.constant 0 : index
    %c0_72 = arith.constant 0 : index
    %332 = vector.load %arg5[%c0_71, %c0_72] : memref<64x128xf32, #tpu.memory_space<vmem>>, vector<64x128xf32>
    %cst_73 = arith.constant dense<0.000000e+00> : vector<8x128xf32>
    %333 = tpu.matmul %331, %332, %cst_73 {dimension_numbers = #tpu.dot_dimension_numbers<[1], [0], [0], [1], [0, 0, 1, 1], [], []>} : vector<8x64xf32>, vector<64x128xf32>, vector<8x128xf32> -> vector<8x128xf32>
    %c0_74 = arith.constant 0 : index
    %c0_75 = arith.constant 0 : index
    %334 = vector.load %arg6[%c0_74, %c0_75] : memref<1x128xf32, #tpu.memory_space<vmem>>, vector<1x128xf32>
    %335 = vector.broadcast %334 : vector<1x128xf32> to vector<8x128xf32>
    %336 = arith.addf %333, %335 : vector<8x128xf32>
    %cst_76 = arith.constant 0.000000e+00 : f32
    %337 = vector.broadcast %cst_76 : f32 to vector<8x128xf32>
    %338 = arith.maximumf %336, %337 : vector<8x128xf32>
    %c0_77 = arith.constant 0 : index
    %c0_78 = arith.constant 0 : index
    %339 = vector.load %arg7[%c0_77, %c0_78] : memref<128x128xf32, #tpu.memory_space<vmem>>, vector<128x128xf32>
    %cst_79 = arith.constant dense<0.000000e+00> : vector<8x128xf32>
    %340 = tpu.matmul %338, %339, %cst_79 {dimension_numbers = #tpu.dot_dimension_numbers<[1], [0], [0], [1], [0, 0, 1, 1], [], []>} : vector<8x128xf32>, vector<128x128xf32>, vector<8x128xf32> -> vector<8x128xf32>
    %c0_80 = arith.constant 0 : index
    %c0_81 = arith.constant 0 : index
    %341 = vector.load %arg8[%c0_80, %c0_81] : memref<1x128xf32, #tpu.memory_space<vmem>>, vector<1x128xf32>
    %342 = vector.broadcast %341 : vector<1x128xf32> to vector<8x128xf32>
    %343 = arith.addf %340, %342 : vector<8x128xf32>
    %c0_82 = arith.constant 0 : index
    %c0_83 = arith.constant 0 : index
    %344 = vector.load %arg9[%c0_82, %c0_83] : memref<8x128xf32, #tpu.memory_space<vmem>>, vector<8x128xf32>
    tpu.vector_store %arg9[%c0_82, %c0_83], %343 {strides = array<i32>} : memref<8x128xf32, #tpu.memory_space<vmem>>, vector<8x128xf32>,
    return
  }
}

</mosaic_0001>

<bundles_post_ra>
// kernel: tpu_custom_call.1
= control target key start
LH: loop header
LB: loop body
LE: loop exit
PB: predicated region body
PF: predicated region fallthrough
CT: control target
= control target key end

     0   :  { %14 = vsyncpa [#allocation4], 0  ;;  %s3489_s0 = inlined_call_operand.hbm [shape: f32[8,64], index: 0, kind: input, shape index: {}]   ;;  %s3490_s1 = inlined_call_operand.hbm [shape: f32[64,256], index: 1, kind: input, shape index: {}]   ;;  %s3491_s2 = inlined_call_operand.vmem [shape: f32[1,256], index: 2, kind: input, shape index: {}]   ;;  %s3492_s3 = inlined_call_operand.hbm [shape: f32[32,128], index: 3, kind: input, shape index: {}]   ;;  %s3493_s4 = inlined_call_operand.hbm [shape: f32[32,128], index: 4, kind: input, shape index: {}]   ;;  %s3494_s5 = inlined_call_operand.hbm [shape: f32[64,128], index: 5, kind: input, shape index: {}]   ;;  %s3495_s6 = inlined_call_operand.vmem [shape: f32[1,128], index: 6, kind: input, shape index: {}]   ;;  %s3496_s7 = inlined_call_operand.hbm [shape: f32[128,128], index: 7, kind: input, shape index: {}]   ;;  %s3497_s8 = inlined_call_operand.vmem [shape: f32[1,128], index: 8, kind: input, shape index: {}]   ;;  %s3498_s9 = inlined_call_operand.hbm [shape: f32[8,128], index: 9, kind: output, shape index: {}]  }
   0x1   :  { %15 = vsyncpa [#allocation7], 0 }
   0x2   :  { %16 = vsyncpa [#allocation10], 0 }
   0x3   :  { %17 = vsyncpa [#allocation13], 0 }
   0x4   :  { %18 = vsyncpa [#allocation5], 0  ;;  %s2964_s30 = smov [#allocation6]   ;;  %s2800_s13 = scalar_lea.hbm %s3490_s1, 2048 }
   0x5   :  { %s34_s10 = sshll.u32 %s2964_s30, 4  ;;  %p2801_p0 = scmp.ne.s32.totalorder %s3490_s1, %s2800_s13  ;;  %s35_s10 = int_to_ptr.vmem [resolvable:$true] %s34_s10 }
   0x6   :  { %p2804_p1 = scmp.lt.u32.totalorder %s2800_s13, %s3490_s1 }
   0x8   :  { %p2806_p2 = pnand %p2804_p1, %p2801_p0 }
   0xa   :  { %2809 = shalt.err (!%p2806_p2)
}
   0xb   :  { %s2810_s18 = scalar_lea.vmem %s35_s10, 2048  ;;  %p2815_p4 = scmp.lt.s32.totalorder %s35_s10, %s35_s10 }
   0xc   :  { %p2811_p3 = scmp.ne.s32.totalorder %s35_s10, %s2810_s18  ;;  %p2816_p5 = scmp.lt.s32.totalorder %s2810_s18, %s2810_s18 }
   0xe   :  { %p2817_p6 = por %p2816_p5, %p2815_p4 }
  0x10   :  { %p2818_p7 = pnand %p2817_p6, %p2811_p3 }
  0x12   :  { %2821 = shalt.err (!%p2818_p7)
}
  0x13   :  { %s2965_s19 = smov 256   ;;  %s2966_s20 = smov 16  }
  0x14   :  { %40 = dma.hbm_to_vmem [thread:$0]  %s3490_s1, 2048, %s35_s10, [#allocation7], %s2965_s19, %s2965_s19, %s2966_s20  }
  0x15   :  { %s2967_s23 = smov [#allocation9]   ;;  %s2968_s25 = smov [#allocation3]  }
  0x16   :  { %s60_s24 = sshll.u32 %s2967_s23, 4  ;;  %s25_s26 = sshll.u32 %s2968_s25, 4  ;;  %s61_s24 = int_to_ptr.vmem [resolvable:$true] %s60_s24  ;;  %s26_s26 = int_to_ptr.vmem [resolvable:$true] %s25_s26 }
  0x17   :  { %s2822_s29 = scalar_lea.hbm %s3493_s4, 512 }
  0x18   :  { %p2823_p8 = scmp.ne.s32.totalorder %s3493_s4, %s2822_s29  ;;  %p2826_p9 = scmp.lt.u32.totalorder %s2822_s29, %s3493_s4 }
  0x1a   :  { %p2828_p10 = pnand %p2826_p9, %p2823_p8 }
  0x1c   :  { %2831 = shalt.err (!%p2828_p10)
}
  0x1d   :  { %s2832_s1 = scalar_lea.vmem %s61_s24, 512  ;;  %p2837_p12 = scmp.lt.s32.totalorder %s61_s24, %s61_s24 }
  0x1e   :  { %p2833_p11 = scmp.ne.s32.totalorder %s61_s24, %s2832_s1  ;;  %p2838_p13 = scmp.lt.s32.totalorder %s2832_s1, %s2832_s1 }
  0x20   :  { %p2839_p0 = por %p2838_p13, %p2837_p12 }
  0x22   :  { %p2840_p1 = pnand %p2839_p0, %p2833_p11 }
  0x24   :  { %2843 = shalt.err (!%p2840_p1)
}
  0x25   :  { %s2969_s10 = smov 128   ;;  %s2970_s14 = smov 8  }
  0x26   :  { %66 = dma.hbm_to_vmem [thread:$0]  %s3493_s4, 512, %s61_s24, [#allocation10], %s2969_s10, %s2969_s10, %s2970_s14  }
  0x27   :  { %s2844_s19 = scalar_lea.hbm %s3489_s0, 128 }
  0x28   :  { %p2845_p2 = scmp.ne.s32.totalorder %s3489_s0, %s2844_s19  ;;  %p2848_p3 = scmp.lt.u32.totalorder %s2844_s19, %s3489_s0 }
  0x2a   :  { %p2850_p4 = pnand %p2848_p3, %p2845_p2 }
  0x2c   :  { %2853 = shalt.err (!%p2850_p4)
}
  0x2d   :  { %s2854_s25 = scalar_lea.vmem %s26_s26, 128  ;;  %p2859_p6 = scmp.lt.s32.totalorder %s26_s26, %s26_s26 }
  0x2e   :  { %p2855_p5 = scmp.ne.s32.totalorder %s26_s26, %s2854_s25  ;;  %p2860_p7 = scmp.lt.s32.totalorder %s2854_s25, %s2854_s25 }
  0x30   :  { %p2861_p8 = por %p2860_p7, %p2859_p6 }
  0x32   :  { %p2862_p9 = pnand %p2861_p8, %p2855_p5 }
  0x34   :  { %2865 = shalt.err (!%p2862_p9)
}
  0x35   :  { %28 = dma.hbm_to_vmem [thread:$0]  %s3489_s0, 128, %s26_s26, [#allocation4]  }
  0x36   :  { %s2971_s27 = smov [#allocation8]   ;;  %s2972_s29 = smov [#allocation11]  }
  0x37   :  { %s48_s28 = sshll.u32 %s2971_s27, 4  ;;  %s72_s30 = sshll.u32 %s2972_s29, 4  ;;  %s49_s28 = int_to_ptr.vmem [resolvable:$true] %s48_s28  ;;  %s73_s30 = int_to_ptr.vmem [resolvable:$true] %s72_s30 }
  0x38   :  { %s2866_s13 = scalar_lea.hbm %s3492_s3, 512 }
  0x39   :  { %p2867_p10 = scmp.ne.s32.totalorder %s3492_s3, %s2866_s13  ;;  %p2870_p11 = scmp.lt.u32.totalorder %s2866_s13, %s3492_s3 }
  0x3b   :  { %p2872_p12 = pnand %p2870_p11, %p2867_p10 }
  0x3d   :  { %2875 = shalt.err (!%p2872_p12)
}
  0x3e   :  { %s2876_s0 = scalar_lea.vmem %s49_s28, 512  ;;  %p2881_p0 = scmp.lt.s32.totalorder %s49_s28, %s49_s28 }
  0x3f   :  { %p2877_p13 = scmp.ne.s32.totalorder %s49_s28, %s2876_s0  ;;  %p2882_p1 = scmp.lt.s32.totalorder %s2876_s0, %s2876_s0 }
  0x41   :  { %p2883_p2 = por %p2882_p1, %p2881_p0 }
  0x43   :  { %p2884_p3 = pnand %p2883_p2, %p2877_p13 }
  0x45   :  { %2887 = shalt.err (!%p2884_p3)
}
  0x46   :  { %54 = dma.hbm_to_vmem [thread:$0]  %s3492_s3, 512, %s49_s28, [#allocation7], %s2969_s10, %s2969_s10, %s2970_s14  }
  0x47   :  { %s2888_s21 = scalar_lea.hbm %s3494_s5, 1024 }
  0x48   :  { %p2889_p4 = scmp.ne.s32.totalorder %s3494_s5, %s2888_s21  ;;  %p2892_p5 = scmp.lt.u32.totalorder %s2888_s21, %s3494_s5 }
  0x4a   :  { %p2894_p6 = pnand %p2892_p5, %p2889_p4 }
  0x4c   :  { %2897 = shalt.err (!%p2894_p6)
}
  0x4d   :  { %s2898_s24 = scalar_lea.vmem %s73_s30, 1024  ;;  %p2903_p8 = scmp.lt.s32.totalorder %s73_s30, %s73_s30 }
  0x4e   :  { %p2899_p7 = scmp.ne.s32.totalorder %s73_s30, %s2898_s24  ;;  %p2904_p9 = scmp.lt.s32.totalorder %s2898_s24, %s2898_s24 }
  0x50   :  { %p2905_p10 = por %p2904_p9, %p2903_p8 }
  0x52   :  { %p2906_p11 = pnand %p2905_p10, %p2899_p7 }
  0x54   :  { %2909 = shalt.err (!%p2906_p11)
}
  0x55   :  { %78 = dma.hbm_to_vmem [thread:$0]  %s3494_s5, 1024, %s73_s30, [#allocation10], %s2969_s10, %s2969_s10, %s2970_s14  }
  0x56   :  { %s2973_s28 = smov [#allocation12]   ;;  %s2910_s13 = scalar_lea.hbm %s3496_s7, 2048 }
  0x57   :  { %s86_s29 = sshll.u32 %s2973_s28, 4  ;;  %p2911_p12 = scmp.ne.s32.totalorder %s3496_s7, %s2910_s13  ;;  %s87_s29 = int_to_ptr.vmem [resolvable:$true] %s86_s29 }
  0x58   :  { %p2914_p13 = scmp.lt.u32.totalorder %s2910_s13, %s3496_s7 }
  0x5a   :  { %p2916_p0 = pnand %p2914_p13, %p2911_p12 }
  0x5c   :  { %2919 = shalt.err (!%p2916_p0)
}
  0x5d   :  { %s2920_s0 = scalar_lea.vmem %s87_s29, 2048  ;;  %p2925_p2 = scmp.lt.s32.totalorder %s87_s29, %s87_s29 }
  0x5e   :  { %p2921_p1 = scmp.ne.s32.totalorder %s87_s29, %s2920_s0  ;;  %p2926_p3 = scmp.lt.s32.totalorder %s2920_s0, %s2920_s0 }
  0x60   :  { %p2927_p4 = por %p2926_p3, %p2925_p2 }
  0x62   :  { %p2928_p5 = pnand %p2927_p4, %p2921_p1 }
  0x64   :  { %2931 = shalt.err (!%p2928_p5)
}
  0x65   :  { %92 = dma.hbm_to_vmem [thread:$0]  %s3496_s7, 2048, %s87_s29, [#allocation13], %s2969_s10, %s2969_s10, %s2970_s14  }
  0x66   :  { %2954 = dma.done.wait [#allocation4], 128  }
  0x67   :  { %2955 = vsyncadd [#allocation4], 4294967168 }
  0x68   :  { %2956 = dma.done.wait [#allocation7], 2560  }
  0x69   :  { %2957 = vsyncadd [#allocation7], 4294964736 }
  0x6a   :  { %2958 = dma.done.wait [#allocation10], 1536  }
  0x6b   :  { %2959 = vsyncadd [#allocation10], 4294965760 }
  0x6c   :  { %2960 = dma.done.wait [#allocation13], 2048  }
  0x6d   :  { %2961 = vsyncadd [#allocation13], 4294965248  ;;  %v2974_v0 = vmov 0.0   ;;  %v2975_v1 = vmov 0.0|0.0   ;;  %vm2976_vm0 = vmmov 0   ;;  %v115_v2 = vld [vmem:[#allocation6 + $0x8] sm:$0xff]  ;;  %v132_v39 = vlaneseq }
  0x6e   :  { %210 = vmatprep.mubr.f32.mxu0 %v2974_v0  ;;  %2530 = vmatprep.subr.bf16.mxu1 %v2975_v1  ;;  %v117_v3 = vld [vmem:[#allocation6 + $0x18] sm:$0xff]  ;;  %v114_v4 = vld [vmem:[#allocation6] sm:$0xff]  ;;  %v116_v6 = vld [vmem:[#allocation6 + $0x10] sm:$0xff]  ;;  %vm142_vm1 = vcmask 523264   ;;  %s2978_s14 = smov 32   ;;  %vm233_vm5 = vcmask 261120  }
  0x6f   :  { %2297 = vmatprep.mubr.msk.f32.mxu1 %vm2976_vm0, %v2974_v0  ;;  %v2508_v5 = vpack.c.bf16 %v117_v3, %v115_v2  ;;  %v119_v7 = vld [vmem:[#allocation6 + $0x28] sm:$0xff]  ;;  %v121_v8 = vld [vmem:[#allocation6 + $0x38] sm:$0xff]  ;;  %v2510_v9 = vpack.c.bf16 %v116_v6, %v114_v4  ;;  %v118_v11 = vld [vmem:[#allocation6 + $0x20] sm:$0xff]  ;;  %v133_v40 = vshrl.u32 %v132_v39, 7  ;;  %v228_v2 = vand.u32 127, %v132_v39  ;;  %s2979_s21 = smov [#allocation14]  }
  0x70   :  { %v2512_v10 = vpack.c.bf16 %v121_v8, %v119_v7  ;;  %v120_v12 = vld [vmem:[#allocation6 + $0x30] sm:$0xff]  ;;  %v123_v13 = vld [vmem:[#allocation6 + $0x48] sm:$0xff]  ;;  %v125_v14 = vld [vmem:[#allocation6 + $0x58] sm:$0xff]  ;;  %vm1923_vm6 = vcmask 1040384   ;;  %vm1925_vm7 = vcmask 1041408   ;;  %vm1927_vm8 = vcmask 1042432  }
  0x71   :  { %2509 = vmatprep.subr.bf16.mxu0 %v2508_v5  ;;  %v2514_v15 = vpack.c.bf16 %v120_v12, %v118_v11  ;;  %v2516_v16 = vpack.c.bf16 %v125_v14, %v123_v13  ;;  %v122_v17 = vld [vmem:[#allocation6 + $0x40] sm:$0xff]  ;;  %v124_v18 = vld [vmem:[#allocation6 + $0x50] sm:$0xff]  ;;  %v127_v19 = vld [vmem:[#allocation6 + $0x68] sm:$0xff]  ;;  %v134_v41 = vsub.s32 0, %v133_v40  ;;  %v138_v43 = vsub.s32 1, %v133_v40  ;;  %s2126_s22 = sshll.u32 %s2979_s21, 4  ;;  %s2127_s22 = int_to_ptr.vmem [resolvable:$true] %s2126_s22 }
  0x72   :  { %2511 = vmatpush1.bf16.msra.mxu0 %v2510_v9  ;;  %v129_v20 = vld [vmem:[#allocation6 + $0x78] sm:$0xff]  ;;  %v223_v21 = vld [vmem:[#allocation9] sm:$0xff]  ;;  %v224_v22 = vld [vmem:[#allocation9 + $0x8] sm:$0xff]  ;;  %v2518_v25 = vpack.c.bf16 %v124_v18, %v122_v17  ;;  %vm229_vm2 = vcmp.ge.s32.totalorder %v228_v2, 64  ;;  %vm230_vm3 = vcmp.lt.s32.totalorder %v228_v2, 96  ;;  %vm1929_vm9 = vcmask 1043456   ;;  %p2937_p7 = scmp.lt.s32.totalorder %s2127_s22, %s2127_s22 }
  0x73   :  { %2513 = vmatprep.subr.bf16.mxu0 %v2512_v10  ;;  %v3118_v23 = vpack.c.bf16 %v224_v22, %v223_v21  ;;  %v225_v24 = vld [vmem:[#allocation9 + $0x10] sm:$0xff]  ;;  %v226_v26 = vld [vmem:[#allocation9 + $0x18] sm:$0xff]  ;;  %v2520_v27 = vpack.c.bf16 %v129_v20, %v127_v19  ;;  %v126_v28 = vld [vmem:[#allocation6 + $0x60] sm:$0xff]  ;;  %vm1931_vm10 = vcmask 1044480   ;;  %vm1933_vm11 = vcmask 1045504   ;;  %s2932_s23 = scalar_lea.vmem %s2127_s22, 128 }
  0x74   :  { %v128_v29 = vld [vmem:[#allocation6 + $0x70] sm:$0xff]  ;;  %v3121_v30 = vpack.c.bf16 %v226_v26, %v225_v24  ;;  %v219_v32 = vld [vmem:[#allocation8] sm:$0xff]  ;;  %v220_v33 = vld [vmem:[#allocation8 + $0x8] sm:$0xff]  ;;  %vm1935_vm12 = vcmask 1046528   ;;  %p2933_p6 = scmp.ne.s32.totalorder %s2127_s22, %s2932_s23  ;;  %p2938_p8 = scmp.lt.s32.totalorder %s2932_s23, %s2932_s23 }
  0x75   :  { %2532 = vmatpush3.bf16.msra.mxu1 %v3118_v23  ;;  %v2522_v31 = vpack.c.bf16 %v128_v29, %v126_v28  ;;  %v113_v34 = vld [vmem:[#allocation3] sm:$0xff]  ;;  %v3126_v35 = vpack.c.bf16 %v220_v33, %v219_v32  ;;  %v221_v36 = vld [vmem:[#allocation8 + $0x10] sm:$0xff]  ;;  %v130_v42 = vld [vmem:[%s3491_s2] sm:$0x3]  ;;  %s2977_s2 = smov 64  }
  0x76   :  { %2515 = vmatpush1.bf16.msra.mxu0 %v2514_v15  ;;  %2533 = vmatprep.subr.bf16.mxu1 %v2975_v1  ;;  %v222_v37 = vld [vmem:[#allocation8 + $0x18] sm:$0xff]  ;;  %v135_v44 = vrot.slane %v130_v42, %v134_v41  ;;  %v139_v46 = vrot.slane %v130_v42, %v138_v43  ;;  %vm3155_vm4 = vmand %vm229_vm2, %vm230_vm3  ;;  %p2939_p9 = por %p2938_p8, %p2937_p7 }
  0x77   :  { %2517 = vmatprep.subr.bf16.mxu0 %v2516_v16  ;;  %v3136_v38 = vpack.c.bf16 %v222_v37, %v221_v36 }
  0x78   :  { %p2940_p10 = pnand %p2939_p9, %p2933_p6 }
  0x79   :  { %2535 = vmatpush3.bf16.msra.mxu1 %v3121_v30 }
  0x7a   :  { %2519 = vmatpush1.bf16.msra.mxu0 %v2518_v25  ;;  %2542 = vmatprep.subr.bf16.mxu1 %v2975_v1 }
  0x7b   :  { %2521 = vmatprep.subr.bf16.mxu0 %v2520_v27 }
  0x7c   :  { %2298 = vmatmul.mubr.f32.vlgmr.msra.gmra.mrb[0].mxu1 %v2974_v0 }
  0x7d   :  { %2544 = vmatpush3.bf16.msra.mxu1 %v3118_v23  ;;  %2319 = vmatprep.mubr.msk.f32.mxu1 %vm2976_vm0, %v2974_v0 }
  0x7e   :  { %2523 = vmatpush1.bf16.msra.mxu0 %v2522_v31  ;;  %2545 = vmatprep.subr.bf16.mxu1 %v2975_v1 }
  0x7f   :  { %2524 = vmatprep.subr.bf16.mxu0 %v2975_v1 }
  0x81   :  { %2138 = vmatmul.mubr.msk.f32.vlgmr.msra.gmra.mrb[0].mxu0 %vm142_vm1, %v113_v34  ;;  %2547 = vmatpush3.bf16.msra.mxu1 %v3121_v30 }
  0x82   :  { %2526 = vmatpush3.bf16.msra.mxu0 %v3126_v35  ;;  %2286 = vmatprep.mubr.msk.f32.mxu0 %vm2976_vm0, %v2974_v0 }
  0x83   :  { %2527 = vmatprep.subr.bf16.mxu0 %v2975_v1  ;;  %2554 = vmatprep.subr.bf16.mxu1 %v2975_v1 }
  0x86   :  { %2529 = vmatpush3.bf16.msra.mxu0 %v3136_v38 }
  0x87   :  { %2536 = vmatprep.subr.bf16.mxu0 %v2975_v1 }
  0x89   :  { %2287 = vmatmul.mubr.f32.vlgmr.msra.gmra.mrb[2].mxu0 %v2974_v0 }
  0x8a   :  { %2538 = vmatpush3.bf16.msra.mxu0 %v3126_v35  ;;  %2308 = vmatprep.mubr.msk.f32.mxu0 %vm2976_vm0, %v2974_v0 }
  0x8b   :  { %2539 = vmatprep.subr.bf16.mxu0 %v2975_v1 }
  0x8e   :  { %2541 = vmatpush3.bf16.msra.mxu0 %v3136_v38 }
  0x8f   :  { %2548 = vmatprep.subr.bf16.mxu0 %v2975_v1 }
 0x14f   :  { %v400_v45 = vpop.f32.mrb[0].mxu1 }
 0x150   :  { %v2299_v47 = vpop.f32.mrb[1].mxu1 }
 0x154   :  { %v212_v48 = vpop.f32.mrb[0].mxu0 }
 0x155   :  { %v213_v49 = vadd.f32 %v212_v48, %v135_v44  ;;  %v214_v50 = vpop.f32.mrb[1].mxu0 }
 0x156   :  { %v215_v51 = vadd.f32 %v214_v50, %v139_v46 }
 0x157   :  { %217 = vst [vmem:[#allocation2] sm:$0xff] %v213_v49 }
 0x158   :  { %218 = vst [vmem:[#allocation2 + $0x8] sm:$0xff] %v215_v51 }
 0x15c   :  { %v303_v52 = vpop.f32.mrb[2].mxu0 }
 0x15d   :  { %v2288_v53 = vpop.f32.mrb[3].mxu0 }
 0x15e   :  { %v232_v54 = vld [vmem:[#allocation2] ss:$0 sm:$0xff]  ;;  %v430_v36 = vld [vmem:[#allocation2 + $0x1] ss:$0 sm:$0xff] }
 0x15f   :  { %v307_v55 = vadd.f32 %v303_v52, %v232_v54  ;;  %v333_v56 = vld [vmem:[#allocation2 + $0xf] ss:$0 sm:$0xff]  ;;  %v532_v29 = vld [vmem:[#allocation2 + $0xe] ss:$0 sm:$0xff] }
 0x160   :  { %v404_v57 = vadd.f32 %v400_v45, %v333_v56 }
 0x161   :  { %v2139_v58 = vmul.f32 -1.442695, %v307_v55 }
 0x162   :  { %v2140_v59 = vmul.f32 -1.442695, %v404_v57 }
 0x163   :  { %2672 = vpow2.f32 %v2139_v58 }
 0x164   :  { %2674 = vpow2.f32 %v2140_v59 }
 0x165   :  { %2676 = vtanh.f32 %v404_v57 }
 0x16d   :  { %v2673_v60 = vpop.eup %2672 }
 0x16e   :  { %v2675_v61 = vpop.eup %2674  ;;  %v312_v62 = vadd.f32 1.0, %v2673_v60 }
 0x16f   :  { %v409_v63 = vadd.f32 1.0, %v2675_v61  ;;  %v2677_v4 = vpop.eup %2676 }
 0x171   :  { %2678 = vrcp.f32 %v409_v63 }
 0x172   :  { %2680 = vrcp.f32 %v312_v62 }
 0x173   :  { %2682 = vtanh.f32 %v307_v55 }
 0x17b   :  { %v2679_v5 = vpop.eup %2678 }
 0x17c   :  { %v412_v6 = vsel %vm3155_vm4, %v2677_v4, %v2679_v5  ;;  %v2681_v7 = vpop.eup %2680 }
 0x17d   :  { %415 = vrot.lane.b32.xlu0 %v412_v6, %s2977_s2  ;;  %v2683_v8 = vpop.eup %2682  ;;  %v413_v14 = vmul.f32 0.0, %v412_v6 }
 0x17e   :  { %v315_v9 = vsel %vm3155_vm4, %v2683_v8, %v2681_v7 }
 0x17f   :  { %v316_v17 = vmul.f32 0.0, %v315_v9 }
 0x181   :  { %318 = vrot.lane.b32.xlu0 %v315_v9, %s2977_s2 }
 0x1ef   :  { %v416_v10 = vpop.permute.xlu0 %415 }
 0x1f0   :  { %v418_v11 = vmul.f32 %v416_v10, %v412_v6 }
 0x1f2   :  { %420 = vrot.lane.b32.xlu1 %v418_v11, %s2978_s14 }
 0x1f3   :  { %v319_v12 = vpop.permute.xlu0 %318 }
 0x1f4   :  { %v321_v13 = vmul.f32 %v319_v12, %v315_v9 }
 0x1f6   :  { %323 = vrot.lane.b32.xlu1 %v321_v13, %s2978_s14 }
 0x264   :  { %v421_v15 = vpop.permute.xlu1 %420 }
 0x265   :  { %v3167_v16 = vadd.f32 %v421_v15, %v413_v14  ;;  %v634_v14 = vld [vmem:[#allocation2 + $0x2] ss:$0 sm:$0xff] }
 0x267   :  { %2684 = vtanh.f32 %v3167_v16 }
 0x268   :  { %v324_v18 = vpop.permute.xlu1 %323 }
 0x269   :  { %v3170_v19 = vadd.f32 %v324_v18, %v316_v17 }
 0x26b   :  { %2686 = vtanh.f32 %v3170_v19 }
 0x271   :  { %v2685_v20 = vpop.eup %2684 }
 0x272   :  { %426 = vrot.lane.b32.xlu0 %v2685_v20, %s2977_s2 }
 0x275   :  { %v2687_v21 = vpop.eup %2686 }
 0x276   :  { %329 = vrot.lane.b32.xlu1 %v2687_v21, %s2977_s2 }
 0x2e4   :  { %v427_v22 = vpop.permute.xlu0 %426 }
 0x2e5   :  { %v3175_v24 = vmul.f32 %v427_v22, %v412_v6 }
 0x2e7   :  { %534 = vrot.lane.b32.xlu0 %v3175_v24, %s2978_s14 }
 0x2e8   :  { %v330_v25 = vpop.permute.xlu1 %329 }
 0x2e9   :  { %v332_v26 = vmul.f32 %v330_v25, %v315_v9  ;;  %v736_v9 = vld [vmem:[#allocation2 + $0xd] ss:$0 sm:$0xff] }
 0x2eb   :  { %432 = vrot.lane.b32.xlu1 %v332_v26, %s2978_s14 }
 0x359   :  { %v535_v27 = vpop.permute.xlu0 %534 }
 0x35a   :  { %2320 = vmatmul.mubr.msk.f32.vlgmr.msra.gmra.mrb[2].mxu1 %vm233_vm5, %v535_v27 }
 0x35b   :  { %2556 = vmatpush3.bf16.msra.mxu1 %v3118_v23  ;;  %2341 = vmatprep.mubr.msk.f32.mxu1 %vm2976_vm0, %v2974_v0 }
 0x35c   :  { %2557 = vmatprep.subr.bf16.mxu1 %v2975_v1 }
 0x35d   :  { %v3185_v28 = vpop.permute.xlu1 %432 }
 0x35e   :  { %2309 = vmatmul.mubr.msk.f32.vlgmr.msra.gmra.mrb[4].mxu0 %vm233_vm5, %v3185_v28 }
 0x35f   :  { %2550 = vmatpush3.bf16.msra.mxu0 %v3126_v35  ;;  %2559 = vmatpush3.bf16.msra.mxu1 %v3121_v30 }
 0x360   :  { %2551 = vmatprep.subr.bf16.mxu0 %v2975_v1  ;;  %2330 = vmatprep.mubr.msk.f32.mxu0 %vm2976_vm0, %v2974_v0 }
 0x361   :  { %2566 = vmatprep.subr.bf16.mxu1 %v2975_v1 }
 0x363   :  { %2553 = vmatpush3.bf16.msra.mxu0 %v3136_v38 }
 0x364   :  { %2560 = vmatprep.subr.bf16.mxu0 %v2975_v1 }
 0x42d   :  { %v604_v31 = vpop.f32.mrb[2].mxu1 }
 0x42e   :  { %v608_v32 = vadd.f32 %v604_v31, %v532_v29  ;;  %v2321_v33 = vpop.f32.mrb[3].mxu1 }
 0x430   :  { %v2144_v34 = vmul.f32 -1.442695, %v608_v32 }
 0x431   :  { %v502_v37 = vpop.f32.mrb[4].mxu0 }
 0x432   :  { %2688 = vpow2.f32 %v2144_v34  ;;  %v506_v39 = vadd.f32 %v502_v37, %v430_v36  ;;  %v2310_v40 = vpop.f32.mrb[5].mxu0 }
 0x434   :  { %v2142_v41 = vmul.f32 -1.442695, %v506_v39 }
 0x436   :  { %2690 = vpow2.f32 %v2142_v41 }
 0x437   :  { %2692 = vtanh.f32 %v608_v32 }
 0x43c   :  { %v2689_v42 = vpop.eup %2688 }
 0x43d   :  { %v613_v43 = vadd.f32 1.0, %v2689_v42 }
 0x43f   :  { %2694 = vrcp.f32 %v613_v43 }
 0x440   :  { %v2691_v44 = vpop.eup %2690  ;;  %2696 = vtanh.f32 %v506_v39 }
 0x441   :  { %v511_v45 = vadd.f32 1.0, %v2691_v44  ;;  %v2693_v46 = vpop.eup %2692 }
 0x443   :  { %2698 = vrcp.f32 %v511_v45 }
 0x449   :  { %v2695_v47 = vpop.eup %2694 }
 0x44a   :  { %v616_v48 = vsel %vm3155_vm4, %v2693_v46, %v2695_v47  ;;  %v2697_v49 = vpop.eup %2696 }
 0x44b   :  { %619 = vrot.lane.b32.xlu0 %v616_v48, %s2977_s2  ;;  %v617_v56 = vmul.f32 %v616_v48, %v3167_v16 }
 0x44d   :  { %v2699_v50 = vpop.eup %2698 }
 0x44e   :  { %v514_v51 = vsel %vm3155_vm4, %v2697_v49, %v2699_v50 }
 0x44f   :  { %517 = vrot.lane.b32.xlu1 %v514_v51, %s2977_s2  ;;  %v515_v59 = vmul.f32 %v514_v51, %v3170_v19 }
 0x4bd   :  { %v620_v52 = vpop.permute.xlu0 %619 }
 0x4be   :  { %v622_v53 = vmul.f32 %v620_v52, %v616_v48 }
 0x4c0   :  { %624 = vrot.lane.b32.xlu0 %v622_v53, %s2978_s14  ;;  %v940_v53 = vld [vmem:[#allocation2 + $0xc] ss:$0 sm:$0xff] }
 0x4c1   :  { %v518_v54 = vpop.permute.xlu1 %517 }
 0x4c2   :  { %v520_v55 = vmul.f32 %v518_v54, %v514_v51 }
 0x4c4   :  { %522 = vrot.lane.b32.xlu1 %v520_v55, %s2978_s14 }
 0x532   :  { %v625_v57 = vpop.permute.xlu0 %624 }
 0x533   :  { %v3206_v58 = vadd.f32 %v625_v57, %v617_v56 }
 0x535   :  { %2700 = vtanh.f32 %v3206_v58 }
 0x536   :  { %v523_v60 = vpop.permute.xlu1 %522 }
 0x537   :  { %v3210_v61 = vadd.f32 %v523_v60, %v515_v59 }
 0x539   :  { %2702 = vtanh.f32 %v3210_v61 }
 0x53f   :  { %v2701_v62 = vpop.eup %2700 }
 0x540   :  { %630 = vrot.lane.b32.xlu0 %v2701_v62, %s2977_s2 }
 0x543   :  { %v2703_v63 = vpop.eup %2702 }
 0x544   :  { %528 = vrot.lane.b32.xlu1 %v2703_v63, %s2977_s2 }
 0x5b2   :  { %v631_v2 = vpop.permute.xlu0 %630 }
 0x5b3   :  { %v3215_v4 = vmul.f32 %v631_v2, %v616_v48 }
 0x5b5   :  { %738 = vrot.lane.b32.xlu0 %v3215_v4, %s2978_s14 }
 0x5b6   :  { %v529_v5 = vpop.permute.xlu1 %528 }
 0x5b7   :  { %v531_v6 = vmul.f32 %v529_v5, %v514_v51 }
 0x5b9   :  { %636 = vrot.lane.b32.xlu1 %v531_v6, %s2978_s14 }
 0x627   :  { %v739_v7 = vpop.permute.xlu0 %738 }
 0x628   :  { %2342 = vmatmul.mubr.msk.f32.vlgmr.msra.gmra.mrb[4].mxu1 %vm233_vm5, %v739_v7 }
 0x629   :  { %2568 = vmatpush3.bf16.msra.mxu1 %v3118_v23  ;;  %2363 = vmatprep.mubr.msk.f32.mxu1 %vm2976_vm0, %v2974_v0 }
 0x62a   :  { %2569 = vmatprep.subr.bf16.mxu1 %v2975_v1 }
 0x62b   :  { %v3225_v8 = vpop.permute.xlu1 %636 }
 0x62c   :  { %2331 = vmatmul.mubr.msk.f32.vlgmr.msra.gmra.mrb[6].mxu0 %vm233_vm5, %v3225_v8 }
 0x62d   :  { %2562 = vmatpush3.bf16.msra.mxu0 %v3126_v35  ;;  %2571 = vmatpush3.bf16.msra.mxu1 %v3121_v30 }
 0x62e   :  { %2563 = vmatprep.subr.bf16.mxu0 %v2975_v1  ;;  %2352 = vmatprep.mubr.msk.f32.mxu0 %vm2976_vm0, %v2974_v0 }
 0x62f   :  { %2578 = vmatprep.subr.bf16.mxu1 %v2975_v1 }
 0x631   :  { %2565 = vmatpush3.bf16.msra.mxu0 %v3136_v38 }
 0x632   :  { %2572 = vmatprep.subr.bf16.mxu0 %v2975_v1 }
 0x6fb   :  { %v808_v10 = vpop.f32.mrb[4].mxu1 }
 0x6fc   :  { %v812_v11 = vadd.f32 %v808_v10, %v736_v9  ;;  %v2343_v12 = vpop.f32.mrb[5].mxu1 }
 0x6fe   :  { %v2148_v13 = vmul.f32 -1.442695, %v812_v11 }
 0x6ff   :  { %v706_v15 = vpop.f32.mrb[6].mxu0 }
 0x700   :  { %2704 = vpow2.f32 %v2148_v13  ;;  %v710_v16 = vadd.f32 %v706_v15, %v634_v14  ;;  %v2332_v17 = vpop.f32.mrb[7].mxu0 }
 0x702   :  { %v2146_v18 = vmul.f32 -1.442695, %v710_v16 }
 0x704   :  { %2706 = vpow2.f32 %v2146_v18 }
 0x705   :  { %2708 = vtanh.f32 %v812_v11 }
 0x70a   :  { %v2705_v19 = vpop.eup %2704 }
 0x70b   :  { %v817_v20 = vadd.f32 1.0, %v2705_v19 }
 0x70d   :  { %2710 = vrcp.f32 %v817_v20 }
 0x70e   :  { %v2707_v21 = vpop.eup %2706  ;;  %2712 = vtanh.f32 %v710_v16 }
 0x70f   :  { %v715_v22 = vadd.f32 1.0, %v2707_v21  ;;  %v2709_v25 = vpop.eup %2708 }
 0x711   :  { %2714 = vrcp.f32 %v715_v22 }
 0x717   :  { %v2711_v26 = vpop.eup %2710 }
 0x718   :  { %v820_v27 = vsel %vm3155_vm4, %v2709_v25, %v2711_v26  ;;  %v2713_v29 = vpop.eup %2712 }
 0x719   :  { %823 = vrot.lane.b32.xlu0 %v820_v27, %s2977_s2  ;;  %v821_v39 = vmul.f32 %v820_v27, %v3206_v58  ;;  %v838_v58 = vld [vmem:[#allocation2 + $0x3] ss:$0 sm:$0xff] }
 0x71b   :  { %v2715_v31 = vpop.eup %2714 }
 0x71c   :  { %v718_v32 = vsel %vm3155_vm4, %v2713_v29, %v2715_v31 }
 0x71d   :  { %721 = vrot.lane.b32.xlu1 %v718_v32, %s2977_s2  ;;  %v719_v42 = vmul.f32 %v718_v32, %v3210_v61 }
 0x78b   :  { %v824_v33 = vpop.permute.xlu0 %823 }
 0x78c   :  { %v826_v34 = vmul.f32 %v824_v33, %v820_v27 }
 0x78e   :  { %828 = vrot.lane.b32.xlu0 %v826_v34, %s2978_s14 }
 0x78f   :  { %v722_v36 = vpop.permute.xlu1 %721 }
 0x790   :  { %v724_v37 = vmul.f32 %v722_v36, %v718_v32 }
 0x792   :  { %726 = vrot.lane.b32.xlu1 %v724_v37, %s2978_s14  ;;  %v1144_v37 = vld [vmem:[#allocation2 + $0xb] ss:$0 sm:$0xff] }
 0x800   :  { %v829_v40 = vpop.permute.xlu0 %828 }
 0x801   :  { %v3246_v41 = vadd.f32 %v829_v40, %v821_v39 }
 0x803   :  { %2716 = vtanh.f32 %v3246_v41 }
 0x804   :  { %v727_v43 = vpop.permute.xlu1 %726 }
 0x805   :  { %v3250_v44 = vadd.f32 %v727_v43, %v719_v42  ;;  %v1042_v43 = vld [vmem:[#allocation2 + $0x4] ss:$0 sm:$0xff] }
 0x807   :  { %2718 = vtanh.f32 %v3250_v44 }
 0x80d   :  { %v2717_v45 = vpop.eup %2716 }
 0x80e   :  { %834 = vrot.lane.b32.xlu0 %v2717_v45, %s2977_s2 }
 0x811   :  { %v2719_v46 = vpop.eup %2718 }
 0x812   :  { %732 = vrot.lane.b32.xlu1 %v2719_v46, %s2977_s2 }
 0x880   :  { %v835_v47 = vpop.permute.xlu0 %834 }
 0x881   :  { %v3255_v48 = vmul.f32 %v835_v47, %v820_v27 }
 0x883   :  { %942 = vrot.lane.b32.xlu0 %v3255_v48, %s2978_s14 }
 0x884   :  { %v733_v49 = vpop.permute.xlu1 %732 }
 0x885   :  { %v735_v50 = vmul.f32 %v733_v49, %v718_v32 }
 0x887   :  { %840 = vrot.lane.b32.xlu1 %v735_v50, %s2978_s14 }
 0x8f5   :  { %v943_v51 = vpop.permute.xlu0 %942 }
 0x8f6   :  { %2364 = vmatmul.mubr.msk.f32.vlgmr.msra.gmra.mrb[6].mxu1 %vm233_vm5, %v943_v51 }
 0x8f7   :  { %2580 = vmatpush3.bf16.msra.mxu1 %v3118_v23  ;;  %2385 = vmatprep.mubr.msk.f32.mxu1 %vm2976_vm0, %v2974_v0 }
 0x8f8   :  { %2581 = vmatprep.subr.bf16.mxu1 %v2975_v1 }
 0x8f9   :  { %v3265_v52 = vpop.permute.xlu1 %840 }
 0x8fa   :  { %2353 = vmatmul.mubr.msk.f32.vlgmr.msra.gmra.mrb[8].mxu0 %vm233_vm5, %v3265_v52 }
 0x8fb   :  { %2574 = vmatpush3.bf16.msra.mxu0 %v3126_v35  ;;  %2583 = vmatpush3.bf16.msra.mxu1 %v3121_v30 }
 0x8fc   :  { %2575 = vmatprep.subr.bf16.mxu0 %v2975_v1  ;;  %2374 = vmatprep.mubr.msk.f32.mxu0 %vm2976_vm0, %v2974_v0 }
 0x8fd   :  { %2590 = vmatprep.subr.bf16.mxu1 %v2975_v1 }
 0x8ff   :  { %2577 = vmatpush3.bf16.msra.mxu0 %v3136_v38 }
 0x900   :  { %2584 = vmatprep.subr.bf16.mxu0 %v2975_v1 }
 0x9c9   :  { %v1012_v54 = vpop.f32.mrb[6].mxu1 }
 0x9ca   :  { %v1016_v55 = vadd.f32 %v1012_v54, %v940_v53  ;;  %v2365_v56 = vpop.f32.mrb[7].mxu1 }
 0x9cc   :  { %v2152_v57 = vmul.f32 -1.442695, %v1016_v55 }
 0x9cd   :  { %v910_v59 = vpop.f32.mrb[8].mxu0 }
 0x9ce   :  { %2720 = vpow2.f32 %v2152_v57  ;;  %v914_v60 = vadd.f32 %v910_v59, %v838_v58  ;;  %v2354_v61 = vpop.f32.mrb[9].mxu0 }
 0x9d0   :  { %v2150_v62 = vmul.f32 -1.442695, %v914_v60 }
 0x9d2   :  { %2722 = vpow2.f32 %v2150_v62 }
 0x9d3   :  { %2724 = vtanh.f32 %v1016_v55 }
 0x9d8   :  { %v2721_v63 = vpop.eup %2720 }
 0x9d9   :  { %v1021_v2 = vadd.f32 1.0, %v2721_v63 }
 0x9db   :  { %2726 = vrcp.f32 %v1021_v2 }
 0x9dc   :  { %v2723_v5 = vpop.eup %2722  ;;  %2728 = vtanh.f32 %v914_v60 }
 0x9dd   :  { %v919_v6 = vadd.f32 1.0, %v2723_v5  ;;  %v2725_v7 = vpop.eup %2724 }
 0x9df   :  { %2730 = vrcp.f32 %v919_v6 }
 0x9e5   :  { %v2727_v9 = vpop.eup %2726 }
 0x9e6   :  { %v1024_v10 = vsel %vm3155_vm4, %v2725_v7, %v2727_v9  ;;  %v2729_v11 = vpop.eup %2728 }
 0x9e7   :  { %1027 = vrot.lane.b32.xlu0 %v1024_v10, %s2977_s2  ;;  %v1025_v18 = vmul.f32 %v1024_v10, %v3246_v41 }
 0x9e9   :  { %v2731_v12 = vpop.eup %2730 }
 0x9ea   :  { %v922_v13 = vsel %vm3155_vm4, %v2729_v11, %v2731_v12 }
 0x9eb   :  { %925 = vrot.lane.b32.xlu1 %v922_v13, %s2977_s2  ;;  %v923_v21 = vmul.f32 %v922_v13, %v3250_v44 }
 0xa59   :  { %v1028_v14 = vpop.permute.xlu0 %1027 }
 0xa5a   :  { %v1030_v15 = vmul.f32 %v1028_v14, %v1024_v10 }
 0xa5c   :  { %1032 = vrot.lane.b32.xlu0 %v1030_v15, %s2978_s14 }
 0xa5d   :  { %v926_v16 = vpop.permute.xlu1 %925 }
 0xa5e   :  { %v928_v17 = vmul.f32 %v926_v16, %v922_v13 }
 0xa60   :  { %930 = vrot.lane.b32.xlu1 %v928_v17, %s2978_s14 }
 0xace   :  { %v1033_v19 = vpop.permute.xlu0 %1032 }
 0xacf   :  { %v3286_v20 = vadd.f32 %v1033_v19, %v1025_v18  ;;  %v1348_v19 = vld [vmem:[#allocation2 + $0xa] ss:$0 sm:$0xff] }
 0xad1   :  { %2732 = vtanh.f32 %v3286_v20 }
 0xad2   :  { %v931_v22 = vpop.permute.xlu1 %930 }
 0xad3   :  { %v3290_v25 = vadd.f32 %v931_v22, %v923_v21 }
 0xad5   :  { %2734 = vtanh.f32 %v3290_v25 }
 0xadb   :  { %v2733_v26 = vpop.eup %2732 }
 0xadc   :  { %1038 = vrot.lane.b32.xlu0 %v2733_v26, %s2977_s2  ;;  %v1246_v26 = vld [vmem:[#allocation2 + $0x5] ss:$0 sm:$0xff] }
 0xadf   :  { %v2735_v27 = vpop.eup %2734 }
 0xae0   :  { %936 = vrot.lane.b32.xlu1 %v2735_v27, %s2977_s2 }
 0xb4e   :  { %v1039_v29 = vpop.permute.xlu0 %1038 }
 0xb4f   :  { %v3295_v31 = vmul.f32 %v1039_v29, %v1024_v10 }
 0xb51   :  { %1146 = vrot.lane.b32.xlu0 %v3295_v31, %s2978_s14 }
 0xb52   :  { %v937_v32 = vpop.permute.xlu1 %936 }
 0xb53   :  { %v939_v33 = vmul.f32 %v937_v32, %v922_v13 }
 0xb55   :  { %1044 = vrot.lane.b32.xlu1 %v939_v33, %s2978_s14 }
 0xbc3   :  { %v1147_v34 = vpop.permute.xlu0 %1146 }
 0xbc4   :  { %2386 = vmatmul.mubr.msk.f32.vlgmr.msra.gmra.mrb[8].mxu1 %vm233_vm5, %v1147_v34 }
 0xbc5   :  { %2592 = vmatpush3.bf16.msra.mxu1 %v3118_v23  ;;  %2407 = vmatprep.mubr.msk.f32.mxu1 %vm2976_vm0, %v2974_v0 }
 0xbc6   :  { %2593 = vmatprep.subr.bf16.mxu1 %v2975_v1 }
 0xbc7   :  { %v3305_v36 = vpop.permute.xlu1 %1044 }
 0xbc8   :  { %2375 = vmatmul.mubr.msk.f32.vlgmr.msra.gmra.mrb[10].mxu0 %vm233_vm5, %v3305_v36 }
 0xbc9   :  { %2586 = vmatpush3.bf16.msra.mxu0 %v3126_v35  ;;  %2595 = vmatpush3.bf16.msra.mxu1 %v3121_v30 }
 0xbca   :  { %2587 = vmatprep.subr.bf16.mxu0 %v2975_v1  ;;  %2396 = vmatprep.mubr.msk.f32.mxu0 %vm2976_vm0, %v2974_v0 }
 0xbcb   :  { %2602 = vmatprep.subr.bf16.mxu1 %v2975_v1 }
 0xbcd   :  { %2589 = vmatpush3.bf16.msra.mxu0 %v3136_v38 }
 0xbce   :  { %2596 = vmatprep.subr.bf16.mxu0 %v2975_v1 }
 0xc97   :  { %v1216_v39 = vpop.f32.mrb[8].mxu1 }
 0xc98   :  { %v1220_v40 = vadd.f32 %v1216_v39, %v1144_v37  ;;  %v2387_v41 = vpop.f32.mrb[9].mxu1 }
 0xc9a   :  { %v2156_v42 = vmul.f32 -1.442695, %v1220_v40 }
 0xc9b   :  { %v1114_v44 = vpop.f32.mrb[10].mxu0 }
 0xc9c   :  { %2736 = vpow2.f32 %v2156_v42  ;;  %v1118_v45 = vadd.f32 %v1114_v44, %v1042_v43  ;;  %v2376_v46 = vpop.f32.mrb[11].mxu0 }
 0xc9e   :  { %v2154_v47 = vmul.f32 -1.442695, %v1118_v45 }
 0xca0   :  { %2738 = vpow2.f32 %v2154_v47 }
 0xca1   :  { %2740 = vtanh.f32 %v1220_v40 }
 0xca6   :  { %v2737_v49 = vpop.eup %2736 }
 0xca7   :  { %v1225_v50 = vadd.f32 1.0, %v2737_v49 }
 0xca9   :  { %2742 = vrcp.f32 %v1225_v50 }
 0xcaa   :  { %v2739_v51 = vpop.eup %2738  ;;  %2744 = vtanh.f32 %v1118_v45 }
 0xcab   :  { %v1123_v53 = vadd.f32 1.0, %v2739_v51  ;;  %v2741_v54 = vpop.eup %2740 }
 0xcad   :  { %2746 = vrcp.f32 %v1123_v53 }
 0xcb3   :  { %v2743_v55 = vpop.eup %2742 }
 0xcb4   :  { %v1228_v56 = vsel %vm3155_vm4, %v2741_v54, %v2743_v55  ;;  %v2745_v57 = vpop.eup %2744 }
 0xcb5   :  { %1231 = vrot.lane.b32.xlu0 %v1228_v56, %s2977_s2  ;;  %v1229_v2 = vmul.f32 %v1228_v56, %v3286_v20 }
 0xcb7   :  { %v2747_v58 = vpop.eup %2746 }
 0xcb8   :  { %v1126_v59 = vsel %vm3155_vm4, %v2745_v57, %v2747_v58 }
 0xcb9   :  { %1129 = vrot.lane.b32.xlu1 %v1126_v59, %s2977_s2  ;;  %v1127_v7 = vmul.f32 %v1126_v59, %v3290_v25 }
 0xd27   :  { %v1232_v60 = vpop.permute.xlu0 %1231 }
 0xd28   :  { %v1234_v61 = vmul.f32 %v1232_v60, %v1228_v56 }
 0xd2a   :  { %1236 = vrot.lane.b32.xlu0 %v1234_v61, %s2978_s14 }
 0xd2b   :  { %v1130_v62 = vpop.permute.xlu1 %1129 }
 0xd2c   :  { %v1132_v63 = vmul.f32 %v1130_v62, %v1126_v59 }
 0xd2e   :  { %1134 = vrot.lane.b32.xlu1 %v1132_v63, %s2978_s14 }
 0xd9c   :  { %v1237_v5 = vpop.permute.xlu0 %1236 }
 0xd9d   :  { %v3326_v6 = vadd.f32 %v1237_v5, %v1229_v2 }
 0xd9f   :  { %2748 = vtanh.f32 %v3326_v6 }
 0xda0   :  { %v1135_v9 = vpop.permute.xlu1 %1134 }
 0xda1   :  { %v3330_v10 = vadd.f32 %v1135_v9, %v1127_v7 }
 0xda3   :  { %2750 = vtanh.f32 %v3330_v10 }
 0xda9   :  { %v2749_v11 = vpop.eup %2748 }
 0xdaa   :  { %1242 = vrot.lane.b32.xlu0 %v2749_v11, %s2977_s2 }
 0xdad   :  { %v2751_v12 = vpop.eup %2750 }
 0xdae   :  { %1140 = vrot.lane.b32.xlu1 %v2751_v12, %s2977_s2  ;;  %v1450_v12 = vld [vmem:[#allocation2 + $0x6] ss:$0 sm:$0xff] }
 0xe1c   :  { %v1243_v13 = vpop.permute.xlu0 %1242 }
 0xe1d   :  { %v3335_v14 = vmul.f32 %v1243_v13, %v1228_v56 }
 0xe1f   :  { %1350 = vrot.lane.b32.xlu0 %v3335_v14, %s2978_s14 }
 0xe20   :  { %v1141_v15 = vpop.permute.xlu1 %1140 }
 0xe21   :  { %v1143_v16 = vmul.f32 %v1141_v15, %v1126_v59 }
 0xe23   :  { %1248 = vrot.lane.b32.xlu1 %v1143_v16, %s2978_s14 }
 0xe91   :  { %v1351_v17 = vpop.permute.xlu0 %1350 }
 0xe92   :  { %2408 = vmatmul.mubr.msk.f32.vlgmr.msra.gmra.mrb[10].mxu1 %vm233_vm5, %v1351_v17 }
 0xe93   :  { %2604 = vmatpush3.bf16.msra.mxu1 %v3118_v23  ;;  %2429 = vmatprep.mubr.msk.f32.mxu1 %vm2976_vm0, %v2974_v0 }
 0xe94   :  { %2605 = vmatprep.subr.bf16.mxu1 %v2975_v1 }
 0xe95   :  { %v3345_v18 = vpop.permute.xlu1 %1248 }
 0xe96   :  { %2397 = vmatmul.mubr.msk.f32.vlgmr.msra.gmra.mrb[12].mxu0 %vm233_vm5, %v3345_v18 }
 0xe97   :  { %2598 = vmatpush3.bf16.msra.mxu0 %v3126_v35  ;;  %2607 = vmatpush3.bf16.msra.mxu1 %v3121_v30 }
 0xe98   :  { %2599 = vmatprep.subr.bf16.mxu0 %v2975_v1  ;;  %2418 = vmatprep.mubr.msk.f32.mxu0 %vm2976_vm0, %v2974_v0 }
 0xe99   :  { %2614 = vmatprep.subr.bf16.mxu1 %v2975_v1 }
 0xe9b   :  { %2601 = vmatpush3.bf16.msra.mxu0 %v3136_v38 }
 0xe9c   :  { %2608 = vmatprep.subr.bf16.mxu0 %v2975_v1 }
 0xf65   :  { %v1420_v20 = vpop.f32.mrb[10].mxu1 }
 0xf66   :  { %v1424_v21 = vadd.f32 %v1420_v20, %v1348_v19  ;;  %v2409_v22 = vpop.f32.mrb[11].mxu1 }
 0xf68   :  { %v2160_v25 = vmul.f32 -1.442695, %v1424_v21 }
 0xf69   :  { %v1318_v27 = vpop.f32.mrb[12].mxu0 }
 0xf6a   :  { %2752 = vpow2.f32 %v2160_v25  ;;  %v1322_v29 = vadd.f32 %v1318_v27, %v1246_v26  ;;  %v2398_v32 = vpop.f32.mrb[13].mxu0 }
 0xf6c   :  { %v2158_v33 = vmul.f32 -1.442695, %v1322_v29 }
 0xf6e   :  { %2754 = vpow2.f32 %v2158_v33 }
 0xf6f   :  { %2756 = vtanh.f32 %v1424_v21 }
 0xf74   :  { %v2753_v34 = vpop.eup %2752 }
 0xf75   :  { %v1429_v37 = vadd.f32 1.0, %v2753_v34 }
 0xf77   :  { %2758 = vrcp.f32 %v1429_v37 }
 0xf78   :  { %v2755_v39 = vpop.eup %2754  ;;  %2760 = vtanh.f32 %v1322_v29 }
 0xf79   :  { %v1327_v40 = vadd.f32 1.0, %v2755_v39  ;;  %v2757_v41 = vpop.eup %2756 }
 0xf7b   :  { %2762 = vrcp.f32 %v1327_v40 }
 0xf81   :  { %v2759_v42 = vpop.eup %2758 }
 0xf82   :  { %v1432_v43 = vsel %vm3155_vm4, %v2757_v41, %v2759_v42  ;;  %v2761_v44 = vpop.eup %2760 }
 0xf83   :  { %1435 = vrot.lane.b32.xlu0 %v1432_v43, %s2977_s2  ;;  %v1433_v53 = vmul.f32 %v1432_v43, %v3326_v6 }
 0xf85   :  { %v2763_v45 = vpop.eup %2762 }
 0xf86   :  { %v1330_v46 = vsel %vm3155_vm4, %v2761_v44, %v2763_v45 }
 0xf87   :  { %1333 = vrot.lane.b32.xlu1 %v1330_v46, %s2977_s2  ;;  %v1331_v56 = vmul.f32 %v1330_v46, %v3330_v10 }
 0xff5   :  { %v1436_v47 = vpop.permute.xlu0 %1435 }
 0xff6   :  { %v1438_v49 = vmul.f32 %v1436_v47, %v1432_v43 }
 0xff8   :  { %1440 = vrot.lane.b32.xlu0 %v1438_v49, %s2978_s14 }
 0xff9   :  { %v1334_v50 = vpop.permute.xlu1 %1333 }
 0xffa   :  { %v1336_v51 = vmul.f32 %v1334_v50, %v1330_v46 }
 0xffc   :  { %1338 = vrot.lane.b32.xlu1 %v1336_v51, %s2978_s14 }
0x106a   :  { %v1441_v54 = vpop.permute.xlu0 %1440 }
0x106b   :  { %v3366_v55 = vadd.f32 %v1441_v54, %v1433_v53  ;;  %v1756_v54 = vld [vmem:[#allocation2 + $0x8] ss:$0 sm:$0xff] }
0x106d   :  { %2764 = vtanh.f32 %v3366_v55 }
0x106e   :  { %v1339_v57 = vpop.permute.xlu1 %1338 }
0x106f   :  { %v3370_v58 = vadd.f32 %v1339_v57, %v1331_v56 }
0x1071   :  { %2766 = vtanh.f32 %v3370_v58 }
0x1077   :  { %v2765_v59 = vpop.eup %2764 }
0x1078   :  { %1446 = vrot.lane.b32.xlu0 %v2765_v59, %s2977_s2  ;;  %v1654_v59 = vld [vmem:[#allocation2 + $0x7] ss:$0 sm:$0xff] }
0x107b   :  { %v2767_v60 = vpop.eup %2766 }
0x107c   :  { %1344 = vrot.lane.b32.xlu1 %v2767_v60, %s2977_s2 }
0x10ea   :  { %v1447_v61 = vpop.permute.xlu0 %1446 }
0x10eb   :  { %v3375_v62 = vmul.f32 %v1447_v61, %v1432_v43 }
0x10ed   :  { %1554 = vrot.lane.b32.xlu0 %v3375_v62, %s2978_s14 }
0x10ee   :  { %v1345_v63 = vpop.permute.xlu1 %1344 }
0x10ef   :  { %v1347_v2 = vmul.f32 %v1345_v63, %v1330_v46 }
0x10f1   :  { %1452 = vrot.lane.b32.xlu1 %v1347_v2, %s2978_s14 }
0x115f   :  { %v1555_v5 = vpop.permute.xlu0 %1554 }
0x1160   :  { %2430 = vmatmul.mubr.msk.f32.vlgmr.msra.gmra.mrb[12].mxu1 %vm233_vm5, %v1555_v5 }
0x1161   :  { %2616 = vmatpush3.bf16.msra.mxu1 %v3118_v23  ;;  %2451 = vmatprep.mubr.msk.f32.mxu1 %vm2976_vm0, %v2974_v0  ;;  %v1552_v23 = vld [vmem:[#allocation2 + $0x9] ss:$0 sm:$0xff] }
0x1162   :  { %2617 = vmatprep.subr.bf16.mxu1 %v2975_v1 }
0x1163   :  { %v3385_v6 = vpop.permute.xlu1 %1452 }
0x1164   :  { %2419 = vmatmul.mubr.msk.f32.vlgmr.msra.gmra.mrb[14].mxu0 %vm233_vm5, %v3385_v6 }
0x1165   :  { %2610 = vmatpush3.bf16.msra.mxu0 %v3126_v35  ;;  %2619 = vmatpush3.bf16.msra.mxu1 %v3121_v30 }
0x1166   :  { %2611 = vmatprep.subr.bf16.mxu0 %v2975_v1  ;;  %2440 = vmatprep.mubr.msk.f32.mxu0 %vm2976_vm0, %v2974_v0 }
0x1167   :  { %2632 = vmatprep.subr.bf16.mxu1 %v2975_v1 }
0x1169   :  { %2613 = vmatpush3.bf16.msra.mxu0 %v3136_v38 }
0x116a   :  { %2620 = vmatprep.subr.bf16.mxu0 %v2975_v1 }
0x1233   :  { %v1624_v7 = vpop.f32.mrb[12].mxu1 }
0x1234   :  { %v1628_v9 = vadd.f32 %v1624_v7, %v1552_v23  ;;  %v2431_v10 = vpop.f32.mrb[13].mxu1 }
0x1236   :  { %v2164_v11 = vmul.f32 -1.442695, %v1628_v9 }
0x1237   :  { %v1522_v35 = vpop.f32.mrb[14].mxu0 }
0x1238   :  { %2768 = vpow2.f32 %v2164_v11  ;;  %v1526_v30 = vadd.f32 %v1522_v35, %v1450_v12  ;;  %v2420_v13 = vpop.f32.mrb[15].mxu0 }
0x123a   :  { %v2162_v15 = vmul.f32 -1.442695, %v1526_v30 }
0x123c   :  { %2770 = vpow2.f32 %v2162_v15 }
0x123d   :  { %2772 = vtanh.f32 %v1628_v9 }
0x1242   :  { %v2769_v16 = vpop.eup %2768 }
0x1243   :  { %v1633_v17 = vadd.f32 1.0, %v2769_v16 }
0x1245   :  { %2774 = vrcp.f32 %v1633_v17 }
0x1246   :  { %v2771_v19 = vpop.eup %2770  ;;  %2776 = vtanh.f32 %v1526_v30 }
0x1247   :  { %v1531_v38 = vadd.f32 1.0, %v2771_v19  ;;  %v2773_v20 = vpop.eup %2772 }
0x1249   :  { %2778 = vrcp.f32 %v1531_v38 }
0x124f   :  { %v2775_v21 = vpop.eup %2774 }
0x1250   :  { %v1636_v22 = vsel %vm3155_vm4, %v2773_v20, %v2775_v21  ;;  %v2777_v25 = vpop.eup %2776 }
0x1251   :  { %1639 = vrot.lane.b32.xlu0 %v1636_v22, %s2977_s2  ;;  %v1637_v37 = vmul.f32 %v1636_v22, %v3366_v55 }
0x1253   :  { %v2779_v26 = vpop.eup %2778 }
0x1254   :  { %v1534_v27 = vsel %vm3155_vm4, %v2777_v25, %v2779_v26 }
0x1255   :  { %1537 = vrot.lane.b32.xlu1 %v1534_v27, %s2977_s2  ;;  %v1535_v41 = vmul.f32 %v1534_v27, %v3370_v58 }
0x12c3   :  { %v1640_v29 = vpop.permute.xlu0 %1639 }
0x12c4   :  { %v1642_v32 = vmul.f32 %v1640_v29, %v1636_v22  ;;  %v1938_v29 = vld [vmem:[#allocation11 + $0x8] sm:$0xff] }
0x12c6   :  { %1644 = vrot.lane.b32.xlu0 %v1642_v32, %s2978_s14  ;;  %v1939_v32 = vld [vmem:[#allocation11 + $0x10] sm:$0xff] }
0x12c7   :  { %v1538_v33 = vpop.permute.xlu1 %1537 }
0x12c8   :  { %v1540_v34 = vmul.f32 %v1538_v33, %v1534_v27 }
0x12ca   :  { %1542 = vrot.lane.b32.xlu1 %v1540_v34, %s2978_s14  ;;  %v1940_v34 = vld [vmem:[#allocation11 + $0x18] sm:$0xff] }
0x1338   :  { %v1645_v39 = vpop.permute.xlu0 %1644 }
0x1339   :  { %v1647_v40 = vadd.f32 %v1645_v39, %v1637_v37  ;;  %v2624_v37 = vpack.c.bf16 %v1940_v34, %v1939_v32  ;;  %v1941_v39 = vld [vmem:[#allocation11 + $0x20] sm:$0xff]  ;;  %v2040_v34 = vld [vmem:[#allocation12 + $0x70] sm:$0xff] }
0x133b   :  { %2780 = vtanh.f32 %v1647_v40 }
0x133c   :  { %v1543_v42 = vpop.permute.xlu1 %1542 }
0x133d   :  { %v1545_v43 = vadd.f32 %v1543_v42, %v1535_v41  ;;  %v1943_v41 = vld [vmem:[#allocation11 + $0x30] sm:$0xff]  ;;  %v1944_v42 = vld [vmem:[#allocation11 + $0x38] sm:$0xff] }
0x133f   :  { %2782 = vtanh.f32 %v1545_v43 }
0x1345   :  { %v2781_v44 = vpop.eup %2780 }
0x1346   :  { %1650 = vrot.lane.b32.xlu0 %v2781_v44, %s2977_s2  ;;  %v2027_v44 = vld [vmem:[#allocation12 + $0x8] sm:$0xff] }
0x1349   :  { %v2783_v45 = vpop.eup %2782 }
0x134a   :  { %1548 = vrot.lane.b32.xlu1 %v2783_v45, %s2977_s2 }
0x13b8   :  { %v1651_v46 = vpop.permute.xlu0 %1650 }
0x13b9   :  { %v1653_v47 = vmul.f32 %v1651_v46, %v1636_v22  ;;  %v2029_v46 = vld [vmem:[#allocation12 + $0x18] sm:$0xff] }
0x13bb   :  { %1758 = vrot.lane.b32.xlu0 %v1653_v47, %s2978_s14 }
0x13bc   :  { %v1549_v49 = vpop.permute.xlu1 %1548 }
0x13bd   :  { %v1551_v50 = vmul.f32 %v1549_v49, %v1534_v27  ;;  %v1937_v27 = vld [vmem:[#allocation11] sm:$0xff] }
0x13be   :  { %v2621_v33 = vpack.c.bf16 %v1938_v29, %v1937_v27 }
0x13bf   :  { %1656 = vrot.lane.b32.xlu1 %v1551_v50, %s2978_s14  ;;  %v2031_v50 = vld [vmem:[#allocation12 + $0x28] sm:$0xff] }
0x142d   :  { %v1759_v51 = vpop.permute.xlu0 %1758 }
0x142e   :  { %2452 = vmatmul.mubr.msk.f32.vlgmr.msra.gmra.mrb[14].mxu1 %vm233_vm5, %v1759_v51 }
0x142f   :  { %2505 = vmatprep.mubr.msk.f32.mxu1 %vm2976_vm0, %v2974_v0 }
0x1431   :  { %v3414_v53 = vpop.permute.xlu1 %1656 }
0x1432   :  { %2441 = vmatmul.mubr.msk.f32.vlgmr.msra.gmra.mrb[16].mxu0 %vm233_vm5, %v3414_v53 }
0x1433   :  { %2470 = vmatprep.mubr.msk.f32.mxu0 %vm2976_vm0, %v2974_v0  ;;  %2622 = vmatpush3.bf16.msra.mxu0 %v2621_v33 }
0x1434   :  { %2623 = vmatprep.subr.bf16.mxu0 %v2975_v1 }
0x1437   :  { %2625 = vmatpush3.bf16.msra.mxu0 %v2624_v37  ;;  %v2041_v37 = vld [vmem:[#allocation12 + $0x78] sm:$0xff] }
0x1438   :  { %2626 = vmatprep.subr.bf16.mxu0 %v2975_v1 }
0x1501   :  { %v1828_v55 = vpop.f32.mrb[14].mxu1 }
0x1502   :  { %v1832_v56 = vadd.f32 %v1828_v55, %v1756_v54  ;;  %v2453_v57 = vpop.f32.mrb[15].mxu1 }
0x1503   :  { %v2033_v57 = vld [vmem:[#allocation12 + $0x38] sm:$0xff] }
0x1504   :  { %v2168_v58 = vmul.f32 -1.442695, %v1832_v56 }
0x1505   :  { %v1726_v60 = vpop.f32.mrb[16].mxu0 }
0x1506   :  { %2784 = vpow2.f32 %v2168_v58  ;;  %v1730_v61 = vadd.f32 %v1726_v60, %v1654_v59  ;;  %v2442_v63 = vpop.f32.mrb[17].mxu0  ;;  %v2034_v59 = vld [vmem:[#allocation12 + $0x40] sm:$0xff]  ;;  %v2035_v60 = vld [vmem:[#allocation12 + $0x48] sm:$0xff] }
0x1507   :  { %v2036_v63 = vld [vmem:[#allocation12 + $0x50] sm:$0xff] }
0x1508   :  { %v2166_v2 = vmul.f32 -1.442695, %v1730_v61 }
0x150a   :  { %2786 = vpow2.f32 %v2166_v2  ;;  %v2037_v2 = vld [vmem:[#allocation12 + $0x58] sm:$0xff] }
0x150b   :  { %2788 = vtanh.f32 %v1832_v56  ;;  %v2032_v56 = vld [vmem:[#allocation12 + $0x30] sm:$0xff] }
0x150c   :  { %v2642_v58 = vpack.c.bf16 %v2033_v57, %v2032_v56 }
0x1510   :  { %v2785_v5 = vpop.eup %2784 }
0x1511   :  { %v1837_v23 = vadd.f32 1.0, %v2785_v5  ;;  %v2648_v5 = vpack.c.bf16 %v2037_v2, %v2036_v63 }
0x1513   :  { %2790 = vrcp.f32 %v1837_v23  ;;  %v2038_v23 = vld [vmem:[#allocation12 + $0x60] sm:$0xff] }
0x1514   :  { %v2787_v7 = vpop.eup %2786  ;;  %2792 = vtanh.f32 %v1730_v61  ;;  %v2645_v61 = vpack.c.bf16 %v2035_v60, %v2034_v59 }
0x1515   :  { %v1735_v9 = vadd.f32 1.0, %v2787_v7  ;;  %v2789_v0 = vpop.eup %2788 }
0x1517   :  { %2794 = vrcp.f32 %v1735_v9 }
0x151d   :  { %v2791_v10 = vpop.eup %2790 }
0x151e   :  { %v1840_v11 = vsel %vm3155_vm4, %v2789_v0, %v2791_v10  ;;  %v2793_v12 = vpop.eup %2792 }
0x151f   :  { %1843 = vrot.lane.b32.xlu0 %v1840_v11, %s2977_s2  ;;  %v1841_v19 = vmul.f32 %v1840_v11, %v1647_v40  ;;  %v1942_v40 = vld [vmem:[#allocation11 + $0x28] sm:$0xff] }
0x1521   :  { %v2795_v35 = vpop.eup %2794 }
0x1522   :  { %v1738_v30 = vsel %vm3155_vm4, %v2793_v12, %v2795_v35 }
0x1523   :  { %1741 = vrot.lane.b32.xlu1 %v1738_v30, %s2977_s2  ;;  %v1739_v21 = vmul.f32 %v1738_v30, %v1545_v43  ;;  %v2026_v43 = vld [vmem:[#allocation12] sm:$0xff] }
0x1524   :  { %v2633_v45 = vpack.c.bf16 %v2027_v44, %v2026_v43  ;;  %v2171_v43 = vld [vmem:[%s3497_s8] ss:$0 sm:$0xff] }
0x1526   :  { %2634 = vmatpush3.bf16.msra.mxu1 %v2633_v45 }
0x1527   :  { %2635 = vmatprep.subr.bf16.mxu1 %v2975_v1 }
0x1591   :  { %v1844_v13 = vpop.permute.xlu0 %1843 }
0x1592   :  { %v1846_v15 = vmul.f32 %v1844_v13, %v1840_v11 }
0x1594   :  { %1848 = vrot.lane.b32.xlu0 %v1846_v15, %s2978_s14 }
0x1595   :  { %v1742_v16 = vpop.permute.xlu1 %1741 }
0x1596   :  { %v1744_v17 = vmul.f32 %v1742_v16, %v1738_v30 }
0x1598   :  { %1746 = vrot.lane.b32.xlu1 %v1744_v17, %s2978_s14 }
0x1606   :  { %v1849_v38 = vpop.permute.xlu0 %1848 }
0x1607   :  { %v1851_v20 = vadd.f32 %v1849_v38, %v1841_v19 }
0x1609   :  { %2796 = vtanh.f32 %v1851_v20 }
0x160a   :  { %v1747_v22 = vpop.permute.xlu1 %1746 }
0x160b   :  { %v1749_v25 = vadd.f32 %v1747_v22, %v1739_v21 }
0x160d   :  { %2798 = vtanh.f32 %v1749_v25 }
0x1613   :  { %v2797_v3 = vpop.eup %2796 }
0x1614   :  { %1854 = vrot.lane.b32.xlu0 %v2797_v3, %s2977_s2 }
0x1617   :  { %v2799_v26 = vpop.eup %2798 }
0x1618   :  { %1865 = vrot.lane.b32.xlu0 %v1653_v47, %s2977_s2  ;;  %1752 = vrot.lane.b32.xlu1 %v2799_v26, %s2977_s2 }
0x161c   :  { %1880 = vrot.lane.b32.xlu0 %v3295_v31, %s2977_s2  ;;  %1870 = vrot.lane.b32.xlu1 %v3375_v62, %s2977_s2  ;;  %v2627_v31 = vpack.c.bf16 %v1942_v40, %v1941_v39  ;;  %v2630_v62 = vpack.c.bf16 %v1944_v42, %v1943_v41  ;;  %v2654_v39 = vpack.c.bf16 %v2041_v37, %v2040_v34  ;;  %v2169_v40 = vld [vmem:[%s3495_s6] ss:$0 sm:$0xff] }
0x161e   :  { %2628 = vmatpush3.bf16.msra.mxu0 %v2627_v31 }
0x161f   :  { %2629 = vmatprep.subr.bf16.mxu0 %v2975_v1 }
0x1620   :  { %1890 = vrot.lane.b32.xlu0 %v3215_v4, %s2977_s2  ;;  %1875 = vrot.lane.b32.xlu1 %v3335_v14, %s2977_s2  ;;  %v2028_v4 = vld [vmem:[#allocation12 + $0x10] sm:$0xff] }
0x1621   :  { %v2636_v49 = vpack.c.bf16 %v2029_v46, %v2028_v4 }
0x1622   :  { %2631 = vmatpush3.bf16.msra.mxu0 %v2630_v62 }
0x1623   :  { %2637 = vmatpush3.bf16.msra.mxu1 %v2636_v49 }
0x1624   :  { %1885 = vrot.lane.b32.xlu1 %v3255_v48, %s2977_s2  ;;  %v2030_v48 = vld [vmem:[#allocation12 + $0x20] sm:$0xff]  ;;  %2638 = vmatprep.subr.bf16.mxu1 %v2975_v1 }
0x1625   :  { %v2639_v55 = vpack.c.bf16 %v2031_v50, %v2030_v48 }
0x1627   :  { %2640 = vmatpush3.bf16.msra.mxu1 %v2639_v55 }
0x1628   :  { %2641 = vmatprep.subr.bf16.mxu1 %v2975_v1 }
0x162b   :  { %2643 = vmatpush3.bf16.msra.mxu1 %v2642_v58 }
0x162c   :  { %2644 = vmatprep.subr.bf16.mxu1 %v2975_v1 }
0x162f   :  { %2646 = vmatpush3.bf16.msra.mxu1 %v2645_v61 }
0x1630   :  { %2647 = vmatprep.subr.bf16.mxu1 %v2975_v1 }
0x1633   :  { %2649 = vmatpush3.bf16.msra.mxu1 %v2648_v5 }
0x1634   :  { %2650 = vmatprep.subr.bf16.mxu1 %v2975_v1 }
0x1686   :  { %v1855_v14 = vpop.permute.xlu0 %1854 }
0x1687   :  { %v1857_v47 = vmul.f32 %v1855_v14, %v1840_v11 }
0x1689   :  { %1860 = vrot.lane.b32.xlu0 %v1857_v47, %s2977_s2 }
0x168a   :  { %v1753_v51 = vpop.permute.xlu1 %1752  ;;  %v1866_v9 = vpop.permute.xlu0 %1865 }
0x168b   :  { %v1755_v54 = vmul.f32 %v1753_v51, %v1738_v30  ;;  %v1868_v35 = vsel %vm233_vm5, %v3225_v8, %v1866_v9 }
0x168c   :  { %v1903_v16 = vrot.slane %v1868_v35, 7 }
0x168d   :  { %1898 = vrot.lane.b32.xlu0 %v3175_v24, %s2977_s2  ;;  %1895 = vrot.lane.b32.xlu1 %v1755_v54, %s2978_s14  ;;  %v2039_v24 = vld [vmem:[#allocation12 + $0x68] sm:$0xff] }
0x168e   :  { %v2651_v7 = vpack.c.bf16 %v2039_v24, %v2038_v23  ;;  %v1871_v0 = vpop.permute.xlu1 %1870  ;;  %v1881_v10 = vpop.permute.xlu0 %1880 }
0x168f   :  { %v1873_v30 = vsel %vm233_vm5, %v3265_v52, %v1871_v0 }
0x1690   :  { %2652 = vmatpush3.bf16.msra.mxu1 %v2651_v7  ;;  %v1906_v19 = vrot.slane %v1873_v30, 6 }
0x1691   :  { %2653 = vmatprep.subr.bf16.mxu1 %v2975_v1  ;;  %v1883_v1 = vsel %vm233_vm5, %v3345_v18, %v1881_v10 }
0x1692   :  { %v1876_v11 = vpop.permute.xlu1 %1875  ;;  %v1891_v12 = vpop.permute.xlu0 %1890  ;;  %v1912_v21 = vrot.slane %v1883_v1, 4 }
0x1693   :  { %v1878_v15 = vsel %vm233_vm5, %v3305_v36, %v1876_v11  ;;  %v1893_v52 = vsel %vm233_vm5, %v3414_v53, %v1891_v12 }
0x1694   :  { %v1909_v20 = vrot.slane %v1878_v15, 5  ;;  %v1918_v27 = vrot.slane %v1893_v52, 2  ;;  %2655 = vmatpush3.bf16.msra.mxu1 %v2654_v39 }
0x1696   :  { %v1886_v13 = vpop.permute.xlu1 %1885 }
0x1697   :  { %v1888_v38 = vsel %vm233_vm5, %v3385_v6, %v1886_v13 }
0x1698   :  { %v1915_v18 = vrot.slane %v1888_v38, 3 }
0x16fb   :  { %v1861_v17 = vpop.permute.xlu0 %1860 }
0x16fc   :  { %v1863_v8 = vsel %vm233_vm5, %v3185_v28, %v1861_v17 }
0x16fd   :  { %v1924_v36 = vsel %vm1923_vm6, %v1863_v8, %v1903_v16 }
0x16fe   :  { %v1926_v22 = vsel %vm1925_vm7, %v1924_v36, %v1906_v19 }
0x16ff   :  { %v1928_v25 = vsel %vm1927_vm8, %v1926_v22, %v1909_v20  ;;  %v1899_v3 = vpop.permute.xlu0 %1898  ;;  %v1896_v26 = vpop.permute.xlu1 %1895 }
0x1700   :  { %v1930_v6 = vsel %vm1929_vm9, %v1928_v25, %v1912_v21  ;;  %v1901_v29 = vsel %vm233_vm5, %v1896_v26, %v1899_v3 }
0x1701   :  { %v1921_v28 = vrot.slane %v1901_v29, 1  ;;  %v1932_v32 = vsel %vm1931_vm10, %v1930_v6, %v1915_v18 }
0x1702   :  { %v1934_v33 = vsel %vm1933_vm11, %v1932_v32, %v1918_v27 }
0x1703   :  { %v1936_v53 = vsel %vm1935_vm12, %v1934_v33, %v1921_v28 }
0x1704   :  { %2471 = vmatmul.mubr.msk.f32.vlgmr.msra.gmra.mrb[18].mxu0 %vm142_vm1, %v1936_v53 }
0x17d7   :  { %v2021_v31 = vpop.f32.mrb[18].mxu0 }
0x17d8   :  { %v2022_v41 = vadd.f32 %v2169_v40, %v2021_v31  ;;  %v2472_v42 = vpop.f32.mrb[19].mxu0 }
0x17da   :  { %v2025_v62 = vmax.f32 %v2022_v41, 0.0 }
0x17dc   :  { %2506 = vmatmul.mubr.f32.vlgmr.msra.gmra.mrb[16].mxu1 %v2025_v62 }
0x18af   :  { %v2115_v44 = vpop.f32.mrb[16].mxu1 }
0x18b0   :  { %v2116_v4 = vadd.f32 %v2171_v43, %v2115_v44  ;;  %v2507_v45 = vpop.f32.mrb[17].mxu1 }
0x18b2   :  { %2119 = vst [vmem:[#allocation14] sm:$0xff] %v2116_v4 }
0x18b3   :  { %2943 = shalt.err (!%p2940_p10)
}
0x18b4   :  { %s2944_s4 = scalar_lea.hbm %s3498_s9, 128 }
0x18b5   :  { %p2945_p11 = scmp.ne.s32.totalorder %s3498_s9, %s2944_s4  ;;  %p2948_p12 = scmp.lt.u32.totalorder %s2944_s4, %s3498_s9 }
0x18b7   :  { %p2950_p13 = pnand %p2948_p12, %p2945_p11 }
0x18b9   :  { %2953 = shalt.err (!%p2950_p13)
}
0x18ba   :  { %2129 = dma.vmem_to_hbm [thread:$0]  %s2127_s22, 128, %s3498_s9, [#allocation5]  }
0x18bb   :  { %2962 = dma.done.wait [#allocation5], 128  }
0x18bc   :  { %2963 = vsyncadd [#allocation5], 4294967168 }
0x18bd   :  { %2133 = vsyncpa [#allocation4], 1 }
0x18be   :  { %2134 = vsyncpa [#allocation7], 1 }
0x18bf   :  { %2135 = vsyncpa [#allocation10], 1 }
0x18c0   :  { %2136 = vsyncpa [#allocation13], 1 }
0x18c1   :  { %2137 = vsyncpa [#allocation5], 1 }

</bundles_post_ra>
